<compile_context>
chip_gen: v5e
topology: v5e:2x2
jax: 0.10.0
libtpu: 0.0.40
codegen_flags: <defaults>
</compile_context>

<pallas_src>
import functools

import jax
import jax.numpy as jnp
from jax.experimental import pallas as pl
from jax.experimental.pallas import tpu as pltpu


def clam_kernel(nvalid_ref, h_ref, w1_ref, b1_ref, wab_ref, bab_ref, wc_ref,
                bc_ref,
                A_ref, m_ref, l_ref, acc_ref, *, tiles_per_core):
    c = pl.program_id(0)                 # core / bag-shard index ("parallel")
    j = pl.program_id(1)                 # tile index within shard ("arbitrary")
    n_tile = h_ref.shape[0]
    D = wc_ref.shape[0]
    n_valid = nvalid_ref[0]
    tile_idx = c * tiles_per_core + j    # global instance-tile index

    # Per-core online-softmax state lives directly in the per-core output
    # blocks (same block index across j -> VMEM-resident accumulators).
    @pl.when(j == 0)
    def _init():
        m_ref[...] = jnp.full(m_ref.shape, -1e30, jnp.float32)
        l_ref[...] = jnp.zeros(l_ref.shape, jnp.float32)
        acc_ref[...] = jnp.zeros(acc_ref.shape, jnp.float32)

    # ---- fc: Linear(L_in -> H) + ReLU. h streamed in native dtype, cast to
    # bf16 at load (no wrapper-side astype/pad HBM pass). f32 accumulation.
    h_blk = h_ref[...].astype(jnp.bfloat16)
    hid = jnp.dot(h_blk, w1_ref[...],
                  preferred_element_type=jnp.float32) + b1_ref[...]
    hid = jnp.maximum(hid, 0.0)                                    # (n_tile, H) f32
    # Rows past the bag length come from an unpadded boundary block (contents
    # unspecified) -> zero them so every downstream matmul stays finite.
    # Cast once to bf16; the f32 copy dies here (smaller live range / spills).
    row = jax.lax.broadcasted_iota(jnp.int32, (n_tile, 1), 0) + tile_idx * n_tile
    hid_b = jnp.where(row < n_valid, hid, 0.0).astype(jnp.bfloat16)

    # ---- fused gated attention projections: one (H, 2D) bf16 matmul ----
    g = jnp.dot(hid_b, wab_ref[...],
                preferred_element_type=jnp.float32) + bab_ref[...]  # (n_tile, 2D)
    g = g.astype(jnp.bfloat16)           # bf16 transcendentals: EUP slot relief
    a = jnp.tanh(g[:, :D])
    b = jax.nn.sigmoid(g[:, D:])
    ab = a * b                                                      # (n_tile, D) bf16

    # ---- attention scores produced directly as (C, n_tile): lane-dense ----
    A_T = jax.lax.dot_general(wc_ref[...], ab, (((0,), (1,)), ((), ())),
                              preferred_element_type=jnp.float32) + bc_ref[...]
    A_ref[...] = A_T                     # raw scores slab (padded cols sliced off)

    # ---- online (flash-style) softmax over instances; mask padded columns ----
    col = jax.lax.broadcasted_iota(jnp.int32, A_T.shape, 1) + tile_idx * n_tile
    valid = col < n_valid
    A_m = jnp.where(valid, A_T, -1e30)

    m_prev = m_ref[...]
    m_new = jnp.maximum(m_prev, jnp.max(A_m, axis=1, keepdims=True))
    alpha = jnp.exp(m_prev - m_new)                                 # (C, 1)
    p = jnp.where(valid, jnp.exp(A_m - m_new), 0.0)                 # (C, n_tile) f32
    l_ref[...] = alpha * l_ref[...] + jnp.sum(p, axis=1, keepdims=True)
    # bf16 x bf16 accumulator matmul (f32 accumulate) per bf16-MXU contract.
    acc_ref[...] = alpha * acc_ref[...] + jnp.dot(
        p.astype(jnp.bfloat16), hid_b, preferred_element_type=jnp.float32)
    m_ref[...] = m_new


def _vmem_limit_bytes(n_tile, L_in, H, D, C, h_itemsize):
    """Rough per-chip VMEM budget for the kernel (double-buffered tiles)."""
    b = 2 * n_tile * L_in * h_itemsize                  # 2x h tiles (native dtype)
    b += 2 * 2 * (L_in * H + H * 2 * D + D * C)         # 2x bf16 weights
    b += 2 * 4 * (H + 2 * D + C)                        # biases
    b += 2 * 4 * C * n_tile                             # A out blocks
    b += 2 * 4 * C * (H + 2)                            # per-core partial outputs
    b += 4 * 4 * n_tile * max(H, 2 * D)                 # activation temporaries
    # v5e scoped default is 16 MiB, v7x physical is 64 MiB: clamp to [32, 64].
    return int(min(max(2 * b, 32 << 20), 64 << 20))


def clam_forward(h, params, n_tile=512, num_cores=2, return_features=False):
    """Returns (logits, Y_prob, Y_hat, A_raw, results_dict) like CLAM.forward."""
    N, L_in = h.shape
    H = params["W1"].shape[1]
    D = params["Wa"].shape[1]
    C = params["Wc"].shape[1]

    # Force the tile to a multiple of 128 (lane-dense A writes, aligned h blocks).
    n_tile = min(n_tile, pl.cdiv(N, 128) * 128)
    n_tile = max(128, pl.cdiv(n_tile, 128) * 128)
    num_tiles = pl.cdiv(N, n_tile)
    num_cores = max(1, min(num_cores, num_tiles))        # shard instance axis
    tiles_per_core = pl.cdiv(num_tiles, num_cores)
    total_tiles = num_cores * tiles_per_core
    N_pad = total_tiles * n_tile

    # Weights are small: bf16 casts here are negligible; h is passed untouched.
    w1 = params["W1"].astype(jnp.bfloat16)
    b1 = params["b1"].astype(jnp.float32)
    wab = jnp.concatenate([params["Wa"], params["Wb"]], axis=1).astype(jnp.bfloat16)
    bab = jnp.concatenate([params["ba"], params["bb"]], axis=1).astype(jnp.float32)
    wc = params["Wc"].astype(jnp.bfloat16)
    bc = params["bc"].astype(jnp.float32).T               # (C, 1)

    const = lambda shp: pl.BlockSpec(shp, lambda c, j, nv: (0,) * len(shp))

    out_shapes = (
        jax.ShapeDtypeStruct((C, N_pad), jnp.float32),          # A_raw (padded cols)
        jax.ShapeDtypeStruct((num_cores, C, 1), jnp.float32),   # per-core running max
        jax.ShapeDtypeStruct((num_cores, C, 1), jnp.float32),   # per-core denominator
        jax.ShapeDtypeStruct((num_cores, C, H), jnp.float32),   # per-core unnorm. M
    )

    # NOTE: constant-index weight blocks are fetched once; Mosaic keeps them
    # resident (single-buffering them explicitly would only trim VMEM further).
    A_pad, part_m, part_l, part_acc = pl.pallas_call(
        functools.partial(clam_kernel, tiles_per_core=tiles_per_core),
        out_shape=out_shapes,
        grid_spec=pltpu.PrefetchScalarGridSpec(
            num_scalar_prefetch=1,                        # n_valid lives in SMEM
            grid=(num_cores, tiles_per_core),
            in_specs=[
                pl.BlockSpec((n_tile, L_in),
                             lambda c, j, nv: (c * tiles_per_core + j, 0)),  # h streamed
                const((L_in, H)), const((1, H)),          # W1, b1 (resident)
                const((H, 2 * D)), const((1, 2 * D)),     # fused Wa|Wb, ba|bb
                const((D, C)), const((C, 1)),             # Wc, bc
            ],
            out_specs=[
                pl.BlockSpec((C, n_tile),
                             lambda c, j, nv: (0, c * tiles_per_core + j)),  # A slab
                pl.BlockSpec((None, C, 1), lambda c, j, nv: (c, 0, 0)),
                pl.BlockSpec((None, C, 1), lambda c, j, nv: (c, 0, 0)),
                pl.BlockSpec((None, C, H), lambda c, j, nv: (c, 0, 0)),
            ]),
        compiler_params=pltpu.CompilerParams(
            dimension_semantics=("parallel", "arbitrary"),
            vmem_limit_bytes=_vmem_limit_bytes(n_tile, L_in, H, D, C,
                                               h.dtype.itemsize)),
    )(jnp.array([N], jnp.int32), h, w1, b1, wab, bab, wc, bc)

    # ---- tiny wrapper-side combine (C*H elements): merge per-core partials
    # with a log-sum-exp combine, then per-class bag classifiers + softmax.
    A_raw = A_pad[:, :N]                                   # (C, N)
    m = jnp.max(part_m, axis=0)                            # (C, 1)
    scale = jnp.exp(part_m - m)                            # (num_cores, C, 1)
    l = jnp.sum(part_l * scale, axis=0)                    # (C, 1)
    M = jnp.sum(part_acc * scale, axis=0) / l              # (C, H)
    logits = (jnp.sum(M * params["Wcls"].astype(jnp.float32), axis=1)
              + params["bcls"][:, 0])[None, :]             # (1, C)
    Y_prob = jax.nn.softmax(logits, axis=1)
    Y_hat = jnp.argmax(logits, axis=1, keepdims=True)      # torch.topk(logits,1)[1]

    results_dict = {}
    if return_features:
        results_dict["features"] = M
    # TODO(synk): instance_eval branch (top-k instance CE loss) and dropout are
    # not implemented; default forward (instance_eval=False, eval mode) only.
    return logits, Y_prob, Y_hat, A_raw, results_dict


def init_params(key, L_in, H, D, C):
    ks = jax.random.split(key, 6)
    scale = lambda fan_in: (2.0 / fan_in) ** 0.5
    return {
        "W1": jax.random.normal(ks[0], (L_in, H), jnp.float32) * scale(L_in),
        "b1": jnp.zeros((1, H), jnp.float32),
        "Wa": jax.random.normal(ks[1], (H, D), jnp.float32) * scale(H),
        "ba": jnp.zeros((1, D), jnp.float32),
        "Wb": jax.random.normal(ks[2], (H, D), jnp.float32) * scale(H),
        "bb": jnp.zeros((1, D), jnp.float32),
        "Wc": jax.random.normal(ks[3], (D, C), jnp.float32) * scale(D),
        "bc": jnp.zeros((1, C), jnp.float32),
        # n_classes independent Linear(H, 1) bag classifiers, stacked row-wise.
        "Wcls": jax.random.normal(ks[4], (C, H), jnp.float32) * scale(H),
        "bcls": jax.random.normal(ks[5], (C, 1), jnp.float32) * 0.01,
    }


def clam_reference(h, p):
    """Pure-JAX reference mirroring the kernel's bf16-matmul precision contract."""
    D = p["Wa"].shape[1]
    hid = jnp.maximum(
        jnp.dot(h.astype(jnp.bfloat16), p["W1"].astype(jnp.bfloat16),
                preferred_element_type=jnp.float32) + p["b1"], 0.0)
    hid_b = hid.astype(jnp.bfloat16)
    wab = jnp.concatenate([p["Wa"], p["Wb"]], axis=1).astype(jnp.bfloat16)
    bab = jnp.concatenate([p["ba"], p["bb"]], axis=1)
    g = (jnp.dot(hid_b, wab, preferred_element_type=jnp.float32) + bab
         ).astype(jnp.bfloat16)
    a = jnp.tanh(g[:, :D])
    b = jax.nn.sigmoid(g[:, D:])
    A = jnp.dot(a * b, p["Wc"].astype(jnp.bfloat16),
                preferred_element_type=jnp.float32) + p["bc"]      # (N, C)
    A_raw = A.T                                                    # (C, N)
    A_soft = jax.nn.softmax(A_raw, axis=1)
    M = jnp.dot(A_soft.astype(jnp.bfloat16), hid_b,
                preferred_element_type=jnp.float32)                # (C, H)
    logits = (jnp.sum(M * p["Wcls"], axis=1) + p["bcls"][:, 0])[None, :]
    Y_prob = jax.nn.softmax(logits, axis=1)
    return logits, Y_prob, A_raw, M


if __name__ == "__main__":
    # Small shapes consistent with the module (bag of N instances, encoding ->
    # hidden -> attention dim, n_classes). N chosen to exercise 2 tiles (one
    # per core shard) plus a ragged, in-kernel-masked tail.
    N, L_in, H, D, C = 300, 256, 128, 64, 2

    key = jax.random.PRNGKey(0)
    k_h, k_p = jax.random.split(key)
    h = jax.random.normal(k_h, (N, L_in), jnp.float32)
    params = init_params(k_p, L_in, H, D, C)

    logits, Y_prob, Y_hat, A_raw, _ = jax.block_until_ready(
        clam_forward(h, params, n_tile=256, num_cores=2))

    ref_logits, ref_prob, ref_A, _ = clam_reference(h, params)
    assert logits.shape == (1, C) and Y_prob.shape == (1, C)
    assert Y_hat.shape == (1, 1) and A_raw.shape == (C, N)
    # bf16 MXU contract on both sides; online vs. global softmax ordering and
    # bf16 p-rounding leave a few-e-3 residual -> 1e-2 tolerances.
    assert jnp.allclose(logits, ref_logits, atol=1e-2, rtol=1e-2)
    assert jnp.allclose(Y_prob, ref_prob, atol=1e-2, rtol=1e-2)
    assert jnp.allclose(A_raw, ref_A, atol=1e-2, rtol=1e-2)

    print("KERNEL_OK")
</pallas_src>

<mosaic_0001>
module attributes {stable_mosaic.version = 11 : i64} {
  func.func @clam_kernel(%arg0: i32, %arg1: i32, %arg2: memref<1xi32, #tpu.memory_space<smem>>, %arg3: memref<256x256xf32, #tpu.memory_space<vmem>>, %arg4: memref<256x128xbf16, #tpu.memory_space<vmem>>, %arg5: memref<1x128xf32, #tpu.memory_space<vmem>>, %arg6: memref<128x128xbf16, #tpu.memory_space<vmem>>, %arg7: memref<1x128xf32, #tpu.memory_space<vmem>>, %arg8: memref<64x2xbf16, #tpu.memory_space<vmem>>, %arg9: memref<2x1xf32, #tpu.memory_space<vmem>>, %arg10: memref<2x256xf32, #tpu.memory_space<vmem>>, %arg11: memref<1x2x1xf32, #tpu.memory_space<vmem>>, %arg12: memref<1x2x1xf32, #tpu.memory_space<vmem>>, %arg13: memref<1x2x128xf32, #tpu.memory_space<vmem>>) attributes {dimension_semantics = [#tpu.dimension_semantics<parallel>, #tpu.dimension_semantics<arbitrary>], iteration_bounds = array<i64: 2, 1>, scalar_prefetch = 1 : i64, scratch_operands = 0 : i64, tpu.core_type = #tpu.core_type<tc>, window_params = [{transform_indices = @transform_0, window_bounds = array<i64: 256, 256>}, {pipeline_mode = #tpu.pipeline_mode<synchronous>, transform_indices = @transform_1, window_bounds = array<i64: 256, 128>}, {pipeline_mode = #tpu.pipeline_mode<synchronous>, transform_indices = @transform_2, window_bounds = array<i64: 1, 128>}, {pipeline_mode = #tpu.pipeline_mode<synchronous>, transform_indices = @transform_3, window_bounds = array<i64: 128, 128>}, {pipeline_mode = #tpu.pipeline_mode<synchronous>, transform_indices = @transform_4, window_bounds = array<i64: 1, 128>}, {pipeline_mode = #tpu.pipeline_mode<synchronous>, transform_indices = @transform_5, window_bounds = array<i64: 64, 2>}, {pipeline_mode = #tpu.pipeline_mode<synchronous>, transform_indices = @transform_6, window_bounds = array<i64: 2, 1>}, {transform_indices = @transform_7, window_bounds = array<i64: 2, 256>}, {transform_indices = @transform_8, window_bounds = array<i64: 1, 2, 1>}, {transform_indices = @transform_9, window_bounds = array<i64: 1, 2, 1>}, {transform_indices = @transform_10, window_bounds = array<i64: 1, 2, 128>}]} {
    %c0 = arith.constant 0 : index
    %0 = memref.load %arg2[%c0] : memref<1xi32, #tpu.memory_space<smem>>
    %c1_i32 = arith.constant 1 : i32
    %1 = arith.muli %arg0, %c1_i32 : i32
    %2 = arith.addi %1, %arg1 : i32
    %c0_i32 = arith.constant 0 : i32
    %3 = arith.cmpi eq, %arg1, %c0_i32 : i32
    %4 = arith.extui %3 : i1 to i32
    %c0_i32_0 = arith.constant 0 : i32
    %5 = arith.cmpi ne, %4, %c0_i32_0 : i32
    scf.if %5 {
      %cst_46 = arith.constant -1.000000e+30 : f32
      %89 = vector.broadcast %cst_46 : f32 to vector<2x1xf32>
      %c0_47 = arith.constant 0 : index
      %c0_48 = arith.constant 0 : index
      %c0_49 = arith.constant 0 : index
      %90 = vector.load %arg11[%c0_47, %c0_48, %c0_49] : memref<1x2x1xf32, #tpu.memory_space<vmem>>, vector<1x2x1xf32>
      %91 = vector.shape_cast %90 : vector<1x2x1xf32> to vector<2x1xf32>
      %92 = vector.shape_cast %89 : vector<2x1xf32> to vector<1x2x1xf32>
      tpu.vector_store %arg11[%c0_47, %c0_48, %c0_49], %92 {strides = array<i32>} : memref<1x2x1xf32, #tpu.memory_space<vmem>>, vector<1x2x1xf32>,
      %cst_50 = arith.constant 0.000000e+00 : f32
      %93 = vector.broadcast %cst_50 : f32 to vector<2x1xf32>
      %c0_51 = arith.constant 0 : index
      %c0_52 = arith.constant 0 : index
      %c0_53 = arith.constant 0 : index
      %94 = vector.load %arg12[%c0_51, %c0_52, %c0_53] : memref<1x2x1xf32, #tpu.memory_space<vmem>>, vector<1x2x1xf32>
      %95 = vector.shape_cast %94 : vector<1x2x1xf32> to vector<2x1xf32>
      %96 = vector.shape_cast %93 : vector<2x1xf32> to vector<1x2x1xf32>
      tpu.vector_store %arg12[%c0_51, %c0_52, %c0_53], %96 {strides = array<i32>} : memref<1x2x1xf32, #tpu.memory_space<vmem>>, vector<1x2x1xf32>,
      %cst_54 = arith.constant 0.000000e+00 : f32
      %97 = vector.broadcast %cst_54 : f32 to vector<2x128xf32>
      %c0_55 = arith.constant 0 : index
      %c0_56 = arith.constant 0 : index
      %c0_57 = arith.constant 0 : index
      %98 = vector.load %arg13[%c0_55, %c0_56, %c0_57] : memref<1x2x128xf32, #tpu.memory_space<vmem>>, vector<1x2x128xf32>
      %99 = vector.shape_cast %98 : vector<1x2x128xf32> to vector<2x128xf32>
      %100 = vector.shape_cast %97 : vector<2x128xf32> to vector<1x2x128xf32>
      tpu.vector_store %arg13[%c0_55, %c0_56, %c0_57], %100 {strides = array<i32>} : memref<1x2x128xf32, #tpu.memory_space<vmem>>, vector<1x2x128xf32>,
    } else {
    }
    %c0_1 = arith.constant 0 : index
    %c0_2 = arith.constant 0 : index
    %6 = vector.load %arg3[%c0_1, %c0_2] : memref<256x256xf32, #tpu.memory_space<vmem>>, vector<256x256xf32>
    %7 = arith.truncf %6 : vector<256x256xf32> to vector<256x256xbf16>
    %c0_3 = arith.constant 0 : index
    %c0_4 = arith.constant 0 : index
    %8 = vector.load %arg4[%c0_3, %c0_4] : memref<256x128xbf16, #tpu.memory_space<vmem>>, vector<256x128xbf16>
    %cst = arith.constant dense<0.000000e+00> : vector<256x128xf32>
    %9 = tpu.matmul %7, %8, %cst {dimension_numbers = #tpu.dot_dimension_numbers<[1], [0], [0], [1], [0, 0, 1, 1], [], []>} : vector<256x256xbf16>, vector<256x128xbf16>, vector<256x128xf32> -> vector<256x128xf32>
    %c0_5 = arith.constant 0 : index
    %c0_6 = arith.constant 0 : index
    %10 = vector.load %arg5[%c0_5, %c0_6] : memref<1x128xf32, #tpu.memory_space<vmem>>, vector<1x128xf32>
    %11 = vector.broadcast %10 : vector<1x128xf32> to vector<256x128xf32>
    %12 = arith.addf %9, %11 : vector<256x128xf32>
    %cst_7 = arith.constant 0.000000e+00 : f32
    %13 = vector.broadcast %cst_7 : f32 to vector<256x128xf32>
    %14 = arith.maximumf %12, %13 : vector<256x128xf32>
    %15 = tpu.iota {dimensions = array<i32: 0>} : vector<256x1xi32>
    %c256_i32 = arith.constant 256 : i32
    %16 = arith.muli %2, %c256_i32 : i32
    %17 = vector.broadcast %16 : i32 to vector<256x1xi32>
    %18 = arith.addi %15, %17 : vector<256x1xi32>
    %19 = vector.broadcast %0 : i32 to vector<256x1xi32>
    %20 = arith.cmpi slt, %18, %19 : vector<256x1xi32>
    %cst_8 = arith.constant 0.000000e+00 : f32
    %21 = vector.shape_cast %20 : vector<256x1xi1> to vector<256x1xi1>
    %22 = vector.broadcast %21 : vector<256x1xi1> to vector<256x128xi1>
    %23 = vector.broadcast %cst_8 : f32 to vector<256x128xf32>
    %24 = arith.select %22, %14, %23 : vector<256x128xi1>, vector<256x128xf32>
    %25 = arith.truncf %24 : vector<256x128xf32> to vector<256x128xbf16>
    %c0_9 = arith.constant 0 : index
    %c0_10 = arith.constant 0 : index
    %26 = vector.load %arg6[%c0_9, %c0_10] : memref<128x128xbf16, #tpu.memory_space<vmem>>, vector<128x128xbf16>
    %cst_11 = arith.constant dense<0.000000e+00> : vector<256x128xf32>
    %27 = tpu.matmul %25, %26, %cst_11 {dimension_numbers = #tpu.dot_dimension_numbers<[1], [0], [0], [1], [0, 0, 1, 1], [], []>} : vector<256x128xbf16>, vector<128x128xbf16>, vector<256x128xf32> -> vector<256x128xf32>
    %c0_12 = arith.constant 0 : index
    %c0_13 = arith.constant 0 : index
    %28 = vector.load %arg7[%c0_12, %c0_13] : memref<1x128xf32, #tpu.memory_space<vmem>>, vector<1x128xf32>
    %29 = vector.broadcast %28 : vector<1x128xf32> to vector<256x128xf32>
    %30 = arith.addf %27, %29 : vector<256x128xf32>
    %31 = arith.truncf %30 : vector<256x128xf32> to vector<256x128xbf16>
    %32 = vector.extract_strided_slice %31 {offsets = [0, 0], sizes = [256, 64], strides = [1, 1]} : vector<256x128xbf16> to vector<256x64xbf16>
    %33 = math.tanh %32 : vector<256x64xbf16>
    %34 = vector.extract_strided_slice %31 {offsets = [0, 64], sizes = [256, 64], strides = [1, 1]} : vector<256x128xbf16> to vector<256x64xbf16>
    %35 = arith.negf %34 : vector<256x64xbf16>
    %36 = math.exp %35 : vector<256x64xbf16>
    %cst_14 = arith.constant 1.000000e+00 : bf16
    %37 = vector.broadcast %cst_14 : bf16 to vector<256x64xbf16>
    %38 = arith.addf %37, %36 : vector<256x64xbf16>
    %39 = arith.divf %37, %38 : vector<256x64xbf16>
    %40 = arith.mulf %33, %39 : vector<256x64xbf16>
    %c0_15 = arith.constant 0 : index
    %c0_16 = arith.constant 0 : index
    %41 = vector.load %arg8[%c0_15, %c0_16] : memref<64x2xbf16, #tpu.memory_space<vmem>>, vector<64x2xbf16>
    %cst_17 = arith.constant dense<0.000000e+00> : vector<2x256xf32>
    %42 = tpu.matmul %41, %40, %cst_17 {dimension_numbers = #tpu.dot_dimension_numbers<[0], [1], [1], [0], [0, 1, 1, 0], [], []>} : vector<64x2xbf16>, vector<256x64xbf16>, vector<2x256xf32> -> vector<2x256xf32>
    %c0_18 = arith.constant 0 : index
    %c0_19 = arith.constant 0 : index
    %43 = vector.load %arg9[%c0_18, %c0_19] : memref<2x1xf32, #tpu.memory_space<vmem>>, vector<2x1xf32>
    %44 = vector.broadcast %43 : vector<2x1xf32> to vector<2x256xf32>
    %45 = arith.addf %42, %44 : vector<2x256xf32>
    %c0_20 = arith.constant 0 : index
    %c0_21 = arith.constant 0 : index
    %46 = vector.load %arg10[%c0_20, %c0_21] : memref<2x256xf32, #tpu.memory_space<vmem>>, vector<2x256xf32>
    tpu.vector_store %arg10[%c0_20, %c0_21], %45 {strides = array<i32>} : memref<2x256xf32, #tpu.memory_space<vmem>>, vector<2x256xf32>,
    %47 = tpu.iota {dimensions = array<i32: 1>} : vector<2x256xi32>
    %c256_i32_22 = arith.constant 256 : i32
    %48 = arith.muli %2, %c256_i32_22 : i32
    %49 = vector.broadcast %48 : i32 to vector<2x256xi32>
    %50 = arith.addi %47, %49 : vector<2x256xi32>
    %51 = vector.broadcast %0 : i32 to vector<2x256xi32>
    %52 = arith.cmpi slt, %50, %51 : vector<2x256xi32>
    %cst_23 = arith.constant -1.000000e+30 : f32
    %53 = vector.broadcast %cst_23 : f32 to vector<2x256xf32>
    %54 = arith.select %52, %45, %53 : vector<2x256xi1>, vector<2x256xf32>
    %c0_24 = arith.constant 0 : index
    %c0_25 = arith.constant 0 : index
    %c0_26 = arith.constant 0 : index
    %55 = vector.load %arg11[%c0_24, %c0_25, %c0_26] : memref<1x2x1xf32, #tpu.memory_space<vmem>>, vector<1x2x1xf32>
    %56 = vector.shape_cast %55 : vector<1x2x1xf32> to vector<2x1xf32>
    %cst_27 = arith.constant dense<0xFF800000> : vector<2xf32>
    %57 = vector.multi_reduction <maximumf>, %54, %cst_27 [1] : vector<2x256xf32> to vector<2xf32>
    %58 = vector.shape_cast %57 : vector<2xf32> to vector<2x1xf32>
    %59 = arith.maximumf %56, %58 : vector<2x1xf32>
    %60 = arith.subf %56, %59 : vector<2x1xf32>
    %61 = math.exp %60 : vector<2x1xf32>
    %62 = vector.broadcast %59 : vector<2x1xf32> to vector<2x256xf32>
    %63 = arith.subf %54, %62 : vector<2x256xf32>
    %64 = math.exp %63 : vector<2x256xf32>
    %cst_28 = arith.constant 0.000000e+00 : f32
    %65 = vector.broadcast %cst_28 : f32 to vector<2x256xf32>
    %66 = arith.select %52, %64, %65 : vector<2x256xi1>, vector<2x256xf32>
    %c0_29 = arith.constant 0 : index
    %c0_30 = arith.constant 0 : index
    %c0_31 = arith.constant 0 : index
    %67 = vector.load %arg12[%c0_29, %c0_30, %c0_31] : memref<1x2x1xf32, #tpu.memory_space<vmem>>, vector<1x2x1xf32>
    %68 = vector.shape_cast %67 : vector<1x2x1xf32> to vector<2x1xf32>
    %69 = arith.mulf %61, %68 : vector<2x1xf32>
    %cst_32 = arith.constant dense<0.000000e+00> : vector<2xf32>
    %70 = vector.multi_reduction <add>, %66, %cst_32 [1] : vector<2x256xf32> to vector<2xf32>
    %71 = vector.shape_cast %70 : vector<2xf32> to vector<2x1xf32>
    %72 = arith.addf %69, %71 : vector<2x1xf32>
    %c0_33 = arith.constant 0 : index
    %c0_34 = arith.constant 0 : index
    %c0_35 = arith.constant 0 : index
    %73 = vector.load %arg12[%c0_33, %c0_34, %c0_35] : memref<1x2x1xf32, #tpu.memory_space<vmem>>, vector<1x2x1xf32>
    %74 = vector.shape_cast %73 : vector<1x2x1xf32> to vector<2x1xf32>
    %75 = vector.shape_cast %72 : vector<2x1xf32> to vector<1x2x1xf32>
    tpu.vector_store %arg12[%c0_33, %c0_34, %c0_35], %75 {strides = array<i32>} : memref<1x2x1xf32, #tpu.memory_space<vmem>>, vector<1x2x1xf32>,
    %c0_36 = arith.constant 0 : index
    %c0_37 = arith.constant 0 : index
    %c0_38 = arith.constant 0 : index
    %76 = vector.load %arg13[%c0_36, %c0_37, %c0_38] : memref<1x2x128xf32, #tpu.memory_space<vmem>>, vector<1x2x128xf32>
    %77 = vector.shape_cast %76 : vector<1x2x128xf32> to vector<2x128xf32>
    %78 = vector.broadcast %61 : vector<2x1xf32> to vector<2x128xf32>
    %79 = arith.mulf %78, %77 : vector<2x128xf32>
    %80 = arith.truncf %66 : vector<2x256xf32> to vector<2x256xbf16>
    %cst_39 = arith.constant dense<0.000000e+00> : vector<2x128xf32>
    %81 = tpu.matmul %80, %25, %cst_39 {dimension_numbers = #tpu.dot_dimension_numbers<[1], [0], [0], [1], [0, 0, 1, 1], [], []>} : vector<2x256xbf16>, vector<256x128xbf16>, vector<2x128xf32> -> vector<2x128xf32>
    %82 = arith.addf %79, %81 : vector<2x128xf32>
    %c0_40 = arith.constant 0 : index
    %c0_41 = arith.constant 0 : index
    %c0_42 = arith.constant 0 : index
    %83 = vector.load %arg13[%c0_40, %c0_41, %c0_42] : memref<1x2x128xf32, #tpu.memory_space<vmem>>, vector<1x2x128xf32>
    %84 = vector.shape_cast %83 : vector<1x2x128xf32> to vector<2x128xf32>
    %85 = vector.shape_cast %82 : vector<2x128xf32> to vector<1x2x128xf32>
    tpu.vector_store %arg13[%c0_40, %c0_41, %c0_42], %85 {strides = array<i32>} : memref<1x2x128xf32, #tpu.memory_space<vmem>>, vector<1x2x128xf32>,
    %c0_43 = arith.constant 0 : index
    %c0_44 = arith.constant 0 : index
    %c0_45 = arith.constant 0 : index
    %86 = vector.load %arg11[%c0_43, %c0_44, %c0_45] : memref<1x2x1xf32, #tpu.memory_space<vmem>>, vector<1x2x1xf32>
    %87 = vector.shape_cast %86 : vector<1x2x1xf32> to vector<2x1xf32>
    %88 = vector.shape_cast %59 : vector<2x1xf32> to vector<1x2x1xf32>
    tpu.vector_store %arg11[%c0_43, %c0_44, %c0_45], %88 {strides = array<i32>} : memref<1x2x1xf32, #tpu.memory_space<vmem>>, vector<1x2x1xf32>,
    return
  }
  func.func @transform_0(%arg0: i32, %arg1: i32, %arg2: memref<1xi32, #tpu.memory_space<smem>>) -> (i32, i32) {
    %c1_i32 = arith.constant 1 : i32
    %0 = arith.muli %arg0, %c1_i32 : i32
    %1 = arith.addi %0, %arg1 : i32
    %c0_i32 = arith.constant 0 : i32
    %c0_i32_0 = arith.constant 0 : i32
    return %1, %c0_i32 : i32, i32
  }
  func.func @transform_1(%arg0: i32, %arg1: i32, %arg2: memref<1xi32, #tpu.memory_space<smem>>) -> (i32, i32) {
    %c0_i32 = arith.constant 0 : i32
    %c0_i32_0 = arith.constant 0 : i32
    %c0_i32_1 = arith.constant 0 : i32
    return %c0_i32, %c0_i32_0 : i32, i32
  }
  func.func @transform_2(%arg0: i32, %arg1: i32, %arg2: memref<1xi32, #tpu.memory_space<smem>>) -> (i32, i32) {
    %c0_i32 = arith.constant 0 : i32
    %c0_i32_0 = arith.constant 0 : i32
    %c0_i32_1 = arith.constant 0 : i32
    return %c0_i32, %c0_i32_0 : i32, i32
  }
  func.func @transform_3(%arg0: i32, %arg1: i32, %arg2: memref<1xi32, #tpu.memory_space<smem>>) -> (i32, i32) {
    %c0_i32 = arith.constant 0 : i32
    %c0_i32_0 = arith.constant 0 : i32
    %c0_i32_1 = arith.constant 0 : i32
    return %c0_i32, %c0_i32_0 : i32, i32
  }
  func.func @transform_4(%arg0: i32, %arg1: i32, %arg2: memref<1xi32, #tpu.memory_space<smem>>) -> (i32, i32) {
    %c0_i32 = arith.constant 0 : i32
    %c0_i32_0 = arith.constant 0 : i32
    %c0_i32_1 = arith.constant 0 : i32
    return %c0_i32, %c0_i32_0 : i32, i32
  }
  func.func @transform_5(%arg0: i32, %arg1: i32, %arg2: memref<1xi32, #tpu.memory_space<smem>>) -> (i32, i32) {
    %c0_i32 = arith.constant 0 : i32
    %c0_i32_0 = arith.constant 0 : i32
    %c0_i32_1 = arith.constant 0 : i32
    return %c0_i32, %c0_i32_0 : i32, i32
  }
  func.func @transform_6(%arg0: i32, %arg1: i32, %arg2: memref<1xi32, #tpu.memory_space<smem>>) -> (i32, i32) {
    %c0_i32 = arith.constant 0 : i32
    %c0_i32_0 = arith.constant 0 : i32
    %c0_i32_1 = arith.constant 0 : i32
    return %c0_i32, %c0_i32_0 : i32, i32
  }
  func.func @transform_7(%arg0: i32, %arg1: i32, %arg2: memref<1xi32, #tpu.memory_space<smem>>) -> (i32, i32) {
    %c1_i32 = arith.constant 1 : i32
    %0 = arith.muli %arg0, %c1_i32 : i32
    %1 = arith.addi %0, %arg1 : i32
    %c0_i32 = arith.constant 0 : i32
    %c0_i32_0 = arith.constant 0 : i32
    return %c0_i32, %1 : i32, i32
  }
  func.func @transform_8(%arg0: i32, %arg1: i32, %arg2: memref<1xi32, #tpu.memory_space<smem>>) -> (i32, i32, i32) {
    %c0_i32 = arith.constant 0 : i32
    %c0_i32_0 = arith.constant 0 : i32
    %c0_i32_1 = arith.constant 0 : i32
    return %arg0, %c0_i32, %c0_i32_0 : i32, i32, i32
  }
  func.func @transform_9(%arg0: i32, %arg1: i32, %arg2: memref<1xi32, #tpu.memory_space<smem>>) -> (i32, i32, i32) {
    %c0_i32 = arith.constant 0 : i32
    %c0_i32_0 = arith.constant 0 : i32
    %c0_i32_1 = arith.constant 0 : i32
    return %arg0, %c0_i32, %c0_i32_0 : i32, i32, i32
  }
  func.func @transform_10(%arg0: i32, %arg1: i32, %arg2: memref<1xi32, #tpu.memory_space<smem>>) -> (i32, i32, i32) {
    %c0_i32 = arith.constant 0 : i32
    %c0_i32_0 = arith.constant 0 : i32
    %c0_i32_1 = arith.constant 0 : i32
    return %arg0, %c0_i32, %c0_i32_0 : i32, i32, i32
  }
}

</mosaic_0001>

<bundles_post_ra>
// kernel: tpu_custom_call.1
= control target key start
LH: loop header
LB: loop body
LE: loop exit
PB: predicated region body
PF: predicated region fallthrough
CT: control target
= control target key end

     0   :  { %s4667_s0 = inlined_call_operand.<no memory space> [shape: s32[1], index: 0, kind: input, shape index: {}]   ;;  %s4668_s1 = inlined_call_operand.hbm [shape: f32[300,256], index: 1, kind: input, shape index: {}]   ;;  %s4669_s2 = inlined_call_operand.hbm [shape: bf16[256,128], index: 2, kind: input, shape index: {}]   ;;  %s4670_s3 = inlined_call_operand.vmem [shape: f32[1,128], index: 3, kind: input, shape index: {}]   ;;  %s4671_s4 = inlined_call_operand.hbm [shape: bf16[128,128], index: 4, kind: input, shape index: {}]   ;;  %s4672_s5 = inlined_call_operand.vmem [shape: f32[1,128], index: 5, kind: input, shape index: {}]   ;;  %s4673_s6 = inlined_call_operand.vmem [shape: bf16[64,2], index: 6, kind: input, shape index: {}]   ;;  %s4674_s7 = inlined_call_operand.vmem [shape: f32[2,1], index: 7, kind: input, shape index: {}]   ;;  %s4675_s8 = inlined_call_operand.hbm [shape: f32[2,512], index: 8, kind: output, shape index: {0}]   ;;  %s4676_s9 = inlined_call_operand.vmem [shape: f32[2,2,1], index: 9, kind: output, shape index: {1}]   ;;  %s4677_s10 = inlined_call_operand.vmem [shape: f32[2,2,1], index: 10, kind: output, shape index: {2}]   ;;  %s4678_s11 = inlined_call_operand.hbm [shape: f32[2,2,128], index: 11, kind: output, shape index: {3}]  }
   0x1   :  { %4728 = sst [smem:[#allocation59_spill]] %s4668_s1 }
   0x2   :  { %4729 = sst [smem:[#allocation60_spill]] %s4669_s2 }
   0x3   :  { %4730 = sst [smem:[#allocation61_spill]] %s4671_s4 }
   0x4   :  { %17 = sst [smem:[#allocation3]] %s4667_s0 }
   0x5   :  { %18 = vsyncpa [#allocation5], 0 }
   0x6   :  { %20 = vsyncpa [#allocation5 + $0x1], 0 }
   0x7   :  { %21 = vsyncpa [#allocation8], 0 }
   0x8   :  { %22 = vsyncpa [#allocation6], 0 }
   0x9   :  { %24 = vsyncpa [#allocation6 + $0x1], 0 }
   0xa   :  { %25 = vsyncpa [#allocation12], 0 }
   0xb   :  { %27 = vsyncpa [#allocation12 + $0x1], 0  ;;  %s3612_s19 = smov 0   ;;  %s3614_s20 = smov 0  }
   0xc   :  { %s3616_s21 = smov 0   ;;  %s3618_s22 = smov 0  }
   0xd   :  { %s3620_s23 = smov 0   ;;  %s3622_s24 = smov 0  }
   0xe LB: > { %4731 = sst [smem:[#allocation17_spill]] %s3523_s21  ;;  %s2600_s0 = sadd.s32 4294967295, %s3535_s24   ;;  %s3535_s24 = sphi %s3622_s24, %s33_s24   ;;  %s3531_s23 = sphi %s3620_s23, %s4874_s23   ;;  %s3527_s22 = sphi %s3618_s22, %s4873_s22   ;;  %s3523_s21 = sphi %s3616_s21, %s4869_s21   ;;  %s3519_s20 = sphi %s3614_s20, %s4872_s20   ;;  %s3515_s19 = sphi %s3612_s19, %s4871_s19  }
   0xf   : > { %4732 = sst [smem:[#allocation18_spill]] %s3535_s24  ;;  %s2601_s25 = sadd.s32 4294967294, %s3535_s24  }
  0x10   : > { %s45_s26 = sadd.s32 1, %s3531_s23  ;;  %s54_s27 = sadd.s32 1, %s3523_s21 }
  0x11   : > { %p47_p0 = scmp.ge.s32.totalorder %s45_s26, 2  ;;  %p61_p1 = scmp.ne.s32.totalorder %s3523_s21, %s3519_s20 }
  0x12   : > { %p62_p2 = scmp.eq.s32.totalorder %s3535_s24, 0  ;;  %p67_p3 = scmp.ne.s32.totalorder %s3519_s20, %s3515_s19 }
  0x13   : > { %s4876_s26 = smov (%p47_p0, %s45_s26), 0  ;;  %p3657_p5 = scmp.eq.s32.totalorder %s2600_s0, 0 }
  0x14   : > { %4733 = sst [smem:[#allocation19_spill]] %s4876_s26  ;;  %p3653_p4 = por %p62_p2, %p61_p1 }
  0x15   : > { %s51_s30 = ssub.s32 %s3531_s23, %s4876_s26  ;;  %p219_p6 = scmp.eq.s32.totalorder %s2600_s0, 1 }
  0x16   : > { %p52_p7 = scmp.eq.s32.totalorder %s51_s30, 0  ;;  %p3665_p8 = por %p3657_p5, %p67_p3 }
  0x17   : > { %p3669_p9 = por %p219_p6, %p61_p1  ;;  %p225_p10 = scmp.eq.s32.totalorder %s2601_s25, 1 }
  0x18   : > { %s3674_s14 = scalar_select %p52_p7, %s3523_s21, %s54_s27  }
  0x19   : > { %p3676_p11 = por %p225_p10, %p67_p3  ;;  %p2602_p12 = scmp.ge.s32.totalorder %s3535_s24, 1 }
  0x1a   : > { %4738 = sst [smem:[#allocation20_spill]] %s3674_s14  ;;  %p310_p13 = scmp.lt.s32.totalorder %s3535_s24, 3 }
  0x1b   : > { %s4739_s15 = scalar_select %p3676_p11, 1, 0 }
  0x1c   : > { %s4741_s2 = sld [smem:[#allocation60_spill]]  ;;  %p3685_p0 = pnand %p2602_p12, %p310_p13 }
  0x1d   : > { %4740 = sst [smem:[#allocation21_spill]] %s4739_s15  ;;  %s3537_s30 = smov [#allocation7]  }
  0x1e   : > { %s323_s25 = sshll.u32 %s3537_s30, 4  ;;  %p2892_p1 = pneg %p3685_p0  ;;  %s324_s25 = int_to_ptr.vmem [resolvable:$true] %s323_s25 }
  0x1f   : > { %s4743_s4 = sld [smem:[#allocation61_spill]]  ;;  %s3538_s16 = smov [#allocation9]  }
  0x20   : > { %p2893_p2 = pnand %p2892_p1, %p3657_p5  ;;  %s340_s17 = sshll.u32 %s3538_s16, 4  ;;  %s341_s17 = int_to_ptr.vmem [resolvable:$true] %s340_s17 }
  0x21   : > { %s3540_s15 = smov 4   ;;  %p4684_p3 = scmp.ge.s32.totalorder %s3535_s24, 2 }
  0x22   : > { %s321_s18 = sshll.u32 %s4741_s2, 4  ;;  %s3539_s2 = smov 64   ;;  %s322_s18 = int_to_ptr.hbm [resolvable:$true] %s321_s18 }
  0x23   : > { %2895 = dma.hbm_to_vmem [thread:$0]  (!%p2893_p2), %s322_s18, 2048, %s324_s25, [#allocation8], %s3539_s2, %s3539_s2, %s3540_s15  }
  0x24   : > { %359 = sbr.rel (%p4684_p3) target bundleno = 84 (0x54), region = 40 }
  0x25   : > { %s338_s14 = sshll.u32 %s4743_s4, 4  ;;  %s339_s14 = int_to_ptr.hbm [resolvable:$true] %s338_s14 }
  0x26   : > { %2898 = dma.hbm_to_vmem [thread:$0]  (!%p2893_p2), %s339_s14, 1024, %s341_s17, [#allocation8], %s3539_s2, %s3539_s2, %s3540_s15  }
  0x29   : > { %362 = sbr.rel (!%p3653_p4) target bundleno = 84 (0x54), region = 44  ;;  %s363_s26 = sand.u32 (%p3653_p4), 1, %s3523_s21  }
  0x2a   : > { %s2607_s30 = sshll.u32 (%p3653_p4), %s3531_s23, 5  ;;  %s2606_s27 = sshll.u32 (%p3653_p4), %s363_s26, 9 }
  0x2b   : > { %s370_s4 = ssub.s32 (%p3653_p4), 38, %s2607_s30  ;;  %s3706_s15 = scalar_lea.sflag (%p3653_p4), [#allocation5], %s363_s26 }
  0x2c   : > { %p371_p6 = scmp.lt.s32.totalorder (%p3653_p4), %s370_s4, 32  ;;  %s367_s25 = scalar_lea.vmem (%p3653_p4), [#allocation4], %s2606_s27 }
  0x2e   : > { %s4878_s4 = smov (!%p371_p6, %s370_s4), 32 }
  0x2f   : > { %s2847_s18 = sshll.u32 %s4878_s4, 4 }
  0x30   : > { %s375_s2 = ssub.s32 512, %s2847_s18 }
  0x31   : > { %s376_s14 = sshll.u32 %s375_s2, 4 }
  0x32   : > { %377 = vsyncadd %s3706_s15, %s376_s14  ;;  %p3709_p4 = scmp.ne.s32.totalorder %s2847_s18, 0  ;;  %s2849_s16 = sshll.u32 %s3531_s23, 9 }
  0x33   : > { %s4745_s1 = sld [smem:[#allocation59_spill]]  ;;  %s3717_s24 = sshll.u32 %s367_s25, 4  ;;  %s386_s24 = int_to_ptr.vmem [resolvable:$true] %s3717_s24 }
  0x34   : > { %s4685_s27 = sshll.u32 %s4878_s4, 8 }
  0x35   : > { %s3380_s18 = sshrl.u32 %s4685_s27, 4 }
  0x39   : > { %s381_s21 = scalar_lea.hbm %s4745_s1, %s2849_s16  ;;  %s3389_s25 = scalar_lea.hbm %s4745_s1, 608 }
  0x3a   : > { %s383_s26 = sshll.u32 %s381_s21, 4  ;;  %s3720_s26 = int_to_ptr.hbm [resolvable:$true] %s383_s26 }
  0x3b   : > { %s3378_s2 = sshra.s32 %s3720_s26, 4  ;;  %s3379_s2 = int_to_ptr.hbm [resolvable:$true] %s3378_s2 }
  0x3c   : > { %s3385_s14 = scalar_lea.hbm %s3379_s2, %s3380_s18 }
  0x3d   : > { %p3386_p7 = scmp.ne.s32.totalorder %s3379_s2, %s3385_s14  ;;  %p3391_p13 = scmp.lt.s32.totalorder %s3389_s25, %s3385_s14 }
  0x3f   : > { %p3387_p10 = pnand %p3386_p7, %p3709_p4 }
  0x41   : > { %p3388_p12 = pneg %p3387_p10 }
  0x43   : > { %p3393_p1 = pnand %p3391_p13, %p3388_p12 }
  0x45   : > { %3396 = shalt.err (!%p3393_p1)
}
  0x46   : > { %s3397_s21 = sshra.s32 %s386_s24, 4  ;;  %s3541_s2 = smov [#allocation4]   ;;  %s3398_s21 = int_to_ptr.vmem [resolvable:$true] %s3397_s21 }
  0x47   : > { %s3404_s30 = scalar_lea.vmem %s3398_s21, %s3380_s18  ;;  %s3408_s27 = scalar_lea.vmem %s3541_s2, 1024 }
  0x48   : > { %p3405_p2 = scmp.ne.s32.totalorder %s3398_s21, %s3404_s30  ;;  %p3410_p7 = scmp.lt.s32.totalorder %s3408_s27, %s3404_s30 }
  0x4a   : > { %p3406_p6 = pnand %p3405_p2, %p3709_p4 }
  0x4c   : > { %p3407_p3 = pneg %p3406_p6 }
  0x4e   : > { %p3412_p10 = pnand %p3410_p7, %p3407_p3 }
  0x50   : > { %3415 = shalt.err (!%p3412_p10)
}
  0x51   : > { %s3542_s17 = smov 256   ;;  %s3543_s14 = smov 16  }
  0x52   : > { %s4746_s16 = sshll.u32 %s4878_s4, 8 }
  0x53   : > { %391 = dma.hbm_to_vmem [thread:$0]  (%p3709_p4), %s3720_s26, %s4746_s16, %s386_s24, %s3706_s15, %s3542_s17, %s3542_s17, %s3543_s14  }
  0x54 PF: > { %397 = sbr.rel (%p3685_p0) target bundleno = 1446 (0x5a6), region = 48 }
  0x59   : > { %s3746_s27 = sand.u32 1, %s3519_s20  }
  0x5a   : > { %s2616_s18 = sshll.u32 %s3746_s27, 9  ;;  %s400_s25 = scalar_lea.sflag [#allocation5], %s3746_s27 }
  0x5b   : > { %s3750_s21 = scalar_lea.vmem [#allocation4], %s2616_s18 }
  0x5c   : > { %3498 = dma.done.wait (%p3665_p8), %s400_s25, 8192  }
  0x5d   : > { %3500 = vsyncadd (%p3665_p8), %s400_s25, 4294959104 }
  0x5e   : > { %3502 = dma.done.wait (%p3657_p5), [#allocation8], 3072  }
  0x5f   : > { %3504 = vsyncadd (%p3657_p5), [#allocation8], 4294964224  ;;  %v2857_v0 = vld [vmem:[#allocation7 + $0x38] sm:$0xff]  ;;  %v2856_v2 = vld [vmem:[#allocation7 + $0x30] sm:$0xff]  ;;  %s483_s4 = sld [smem:[#allocation3]]  ;;  %s2687_s12 = sshll.u32 %s3527_s22, 8 }
  0x60   : > { %v2865_v1 = vld [vmem:[#allocation7 + $0x78] sm:$0xff]  ;;  %721 = vmatpush.bf16.msra.mxu0 %v2857_v0  ;;  %v2864_v3 = vld [vmem:[#allocation7 + $0x70] sm:$0xff]  ;;  %v2855_v4 = vld [vmem:[#allocation7 + $0x28] sm:$0xff]  ;;  %s3545_s30 = smov 64   ;;  %p473_p5 = scmp.lt.s32.totalorder %s3527_s22, 1 }
  0x61   : > { %810 = vmatpush.bf16.msra.mxu1 %v2865_v1  ;;  %v2863_v5 = vld [vmem:[#allocation7 + $0x68] sm:$0xff]  ;;  %v2854_v6 = vld [vmem:[#allocation7 + $0x20] sm:$0xff]  ;;  %v2853_v8 = vld [vmem:[#allocation7 + $0x18] sm:$0xff]  ;;  %s2619_s17 = sshll.u32 %s3746_s27, 2  ;;  %s2620_s16 = sshll.u32 %s3746_s27, 1 }
  0x62   : > { %v2862_v7 = vld [vmem:[#allocation7 + $0x60] sm:$0xff]  ;;  %v2861_v9 = vld [vmem:[#allocation7 + $0x58] sm:$0xff]  ;;  %v2852_v10 = vld [vmem:[#allocation7 + $0x10] sm:$0xff]  ;;  %s4551_s15 = scalar_select %p473_p5, %s3527_s22, 1 }
  0x63   : > { %v2860_v11 = vld [vmem:[#allocation7 + $0x50] sm:$0xff]  ;;  %v2851_v12 = vld [vmem:[#allocation7 + $0x8] sm:$0xff]  ;;  %v2850_v14 = vld [vmem:[#allocation7] sm:$0xff]  ;;  %s4576_s14 = scalar_lea.vmem [#allocation10], %s2619_s17  ;;  %s2878_s24 = sshll.u32 %s3527_s22, 2 }
  0x64   : > { %722 = vmatpush.bf16.msra.mxu0 %v2856_v2  ;;  %v2859_v13 = vld [vmem:[#allocation7 + $0x48] sm:$0xff]  ;;  %v2858_v15 = vld [vmem:[#allocation7 + $0x40] sm:$0xff]  ;;  %v495_v17 = vld [vmem:[%s3750_s21 + $0x10] sm:$0xff]  ;;  %s2621_s28 = sshll.u32 %s4551_s15, 1  ;;  %s2395_s0 = scalar_lea.hbm %s4675_s8, %s2878_s24 }
  0x65   : > { %811 = vmatpush.bf16.msra.mxu1 %v2864_v3  ;;  %v493_v16 = vld [vmem:[%s3750_s21] sm:$0xff]  ;;  %v494_v18 = vld [vmem:[%s3750_s21 + $0x8] sm:$0xff]  ;;  %v496_v19 = vld [vmem:[%s3750_s21 + $0x18] sm:$0xff]  ;;  %s4559_s2 = scalar_lea.vmem %s4676_s9, %s2621_s28  ;;  %s2397_s15 = sshll.u32 %s4576_s14, 4  ;;  %s2398_s15 = int_to_ptr.vmem [resolvable:$true] %s2397_s15 }
  0x66   : > { %v557_v20 = vpack.c.bf16 %v495_v17, %v493_v16  ;;  %v558_v21 = vpack.c.bf16 %v496_v19, %v494_v18  ;;  %v497_v22 = vld [vmem:[%s3750_s21 + $0x20] sm:$0xff]  ;;  %v499_v23 = vld [vmem:[%s3750_s21 + $0x30] sm:$0xff]  ;;  %v498_v24 = vld [vmem:[%s3750_s21 + $0x28] sm:$0xff]  ;;  %s2370_s26 = scalar_lea.sflag [#allocation6], %s3746_s27  ;;  %s3437_s18 = scalar_lea.hbm %s4675_s8, 8 }
  0x67   : > { %v500_v25 = vld [vmem:[%s3750_s21 + $0x38] sm:$0xff]  ;;  %v559_v26 = vpack.c.bf16 %v499_v23, %v497_v22  ;;  %v501_v28 = vld [vmem:[%s3750_s21 + $0x40] sm:$0xff]  ;;  %v503_v29 = vld [vmem:[%s3750_s21 + $0x50] sm:$0xff] }
  0x68   : > { %723 = vmatpush.bf16.msra.mxu0 %v2855_v4  ;;  %v560_v27 = vpack.c.bf16 %v500_v25, %v498_v24  ;;  %v502_v30 = vld [vmem:[%s3750_s21 + $0x48] sm:$0xff]  ;;  %v504_v31 = vld [vmem:[%s3750_s21 + $0x58] sm:$0xff]  ;;  %v561_v32 = vpack.c.bf16 %v503_v29, %v501_v28  ;;  %v505_v34 = vld [vmem:[%s3750_s21 + $0x60] sm:$0xff] }
  0x69   : > { %812 = vmatpush.bf16.msra.mxu1 %v2863_v5  ;;  %v562_v33 = vpack.c.bf16 %v504_v31, %v502_v30  ;;  %v507_v35 = vld [vmem:[%s3750_s21 + $0x70] sm:$0xff]  ;;  %v506_v36 = vld [vmem:[%s3750_s21 + $0x68] sm:$0xff]  ;;  %v508_v37 = vld [vmem:[%s3750_s21 + $0x78] sm:$0xff] }
  0x6a   : > { %v563_v38 = vpack.c.bf16 %v507_v35, %v505_v34  ;;  %v564_v39 = vpack.c.bf16 %v508_v37, %v506_v36  ;;  %v509_v40 = vld [vmem:[%s3750_s21 + $0x80] sm:$0xff]  ;;  %v511_v41 = vld [vmem:[%s3750_s21 + $0x90] sm:$0xff]  ;;  %v510_v42 = vld [vmem:[%s3750_s21 + $0x88] sm:$0xff]  ;;  %v4749_v36 = vmov 0 }
  0x6b   : > { %v512_v43 = vld [vmem:[%s3750_s21 + $0x98] sm:$0xff]  ;;  %v565_v44 = vpack.c.bf16 %v511_v41, %v509_v40  ;;  %v513_v47 = vld [vmem:[%s3750_s21 + $0xa0] sm:$0xff]  ;;  %v515_v48 = vld [vmem:[%s3750_s21 + $0xb0] sm:$0xff] }
  0x6c   : > { %724 = vmatpush.bf16.msra.mxu0 %v2854_v6  ;;  %v566_v45 = vpack.c.bf16 %v512_v43, %v510_v42  ;;  %v2873_v46 = vld [vmem:[#allocation9 + $0x38] sm:$0xff]  ;;  %v514_v49 = vld [vmem:[%s3750_s21 + $0xa8] sm:$0xff]  ;;  %v567_v51 = vpack.c.bf16 %v515_v48, %v513_v47  ;;  %v2872_v53 = vld [vmem:[#allocation9 + $0x30] sm:$0xff] }
  0x6d   : > { %813 = vmatpush.bf16.msra.mxu1 %v2862_v7  ;;  %1211 = vmatpush.bf16.msra.mxu2 %v2873_v46  ;;  %v516_v50 = vld [vmem:[%s3750_s21 + $0xb8] sm:$0xff]  ;;  %v2871_v54 = vld [vmem:[#allocation9 + $0x28] sm:$0xff]  ;;  %v2870_v55 = vld [vmem:[#allocation9 + $0x20] sm:$0xff] }
  0x6e   : > { %v568_v52 = vpack.c.bf16 %v516_v50, %v514_v49  ;;  %v517_v56 = vld [vmem:[%s3750_s21 + $0xc0] sm:$0xff]  ;;  %v519_v57 = vld [vmem:[%s3750_s21 + $0xd0] sm:$0xff]  ;;  %v518_v58 = vld [vmem:[%s3750_s21 + $0xc8] sm:$0xff] }
  0x6f   : > { %v520_v59 = vld [vmem:[%s3750_s21 + $0xd8] sm:$0xff]  ;;  %v569_v60 = vpack.c.bf16 %v519_v57, %v517_v56  ;;  %v2868_v63 = vld [vmem:[#allocation9 + $0x10] sm:$0xff]  ;;  %v2867_v0 = vld [vmem:[#allocation9 + $0x8] sm:$0xff] }
  0x70   : > { %725 = vmatpush.bf16.msra.mxu0 %v2853_v8  ;;  %v570_v61 = vpack.c.bf16 %v520_v59, %v518_v58  ;;  %v2869_v62 = vld [vmem:[#allocation9 + $0x18] sm:$0xff]  ;;  %v521_v1 = vld [vmem:[%s3750_s21 + $0xe0] sm:$0xff]  ;;  %v523_v2 = vld [vmem:[%s3750_s21 + $0xf0] sm:$0xff]  ;;  %v4753_v58 = vmov 0 }
  0x71   : > { %814 = vmatpush.bf16.msra.mxu1 %v2861_v9  ;;  %1212 = vmatpush.bf16.msra.mxu2 %v2872_v53  ;;  %v522_v3 = vld [vmem:[%s3750_s21 + $0xe8] sm:$0xff]  ;;  %v524_v4 = vld [vmem:[%s3750_s21 + $0xf8] sm:$0xff]  ;;  %v2866_v5 = vld [vmem:[#allocation9] sm:$0xff]  ;;  %v571_v6 = vpack.c.bf16 %v523_v2, %v521_v1  ;;  %v4686_v9 = vlaneseq }
  0x72   : > { %v572_v7 = vpack.c.bf16 %v524_v4, %v522_v3  ;;  %v525_v8 = vld [vmem:[%s3750_s21 + $0x100] sm:$0xff]  ;;  %v531_v31 = vld [vmem:[%s3750_s21 + $0x130] sm:$0xff] }
  0x73   : > { %v3802_v18 = vld [vmem:[%s4670_s3] ss:$0 sm:$0xff]  ;;  %v535_v53 = vld [vmem:[%s3750_s21 + $0x150] sm:$0xff] }
  0x74   : > { %726 = vmatpush.bf16.msra.mxu0 %v2852_v10  ;;  %v527_v10 = vld [vmem:[%s3750_s21 + $0x110] sm:$0xff]  ;;  %v529_v30 = vld [vmem:[%s3750_s21 + $0x120] sm:$0xff] }
  0x75   : > { %815 = vmatpush.bf16.msra.mxu1 %v2860_v11  ;;  %1213 = vmatpush.bf16.msra.mxu2 %v2871_v54  ;;  %v526_v11 = vld [vmem:[%s3750_s21 + $0x108] sm:$0xff] }
  0x76   : > { %v534_v54 = vld [vmem:[%s3750_s21 + $0x148] sm:$0xff] }
  0x78   : > { %727 = vmatpush.bf16.msra.mxu0 %v2851_v12  ;;  %v528_v12 = vld [vmem:[%s3750_s21 + $0x118] sm:$0xff] }
  0x79   : > { %816 = vmatpush.bf16.msra.mxu1 %v2859_v13  ;;  %1214 = vmatpush.bf16.msra.mxu2 %v2870_v55  ;;  %v573_v13 = vpack.c.bf16 %v527_v10, %v525_v8  ;;  %v536_v55 = vld [vmem:[%s3750_s21 + $0x158] sm:$0xff] }
  0x7c   : > { %728 = vmatpush.bf16.msra.mxu0 %v2850_v14  ;;  %v574_v14 = vpack.c.bf16 %v528_v12, %v526_v11  ;;  %v537_v11 = vld [vmem:[%s3750_s21 + $0x160] sm:$0xff]  ;;  %v539_v12 = vld [vmem:[%s3750_s21 + $0x170] sm:$0xff] }
  0x7d   : > { %817 = vmatpush.bf16.msra.mxu1 %v2858_v15  ;;  %1215 = vmatpush.bf16.msra.mxu2 %v2869_v62  ;;  %v3797_v15 = vshrl.u32 %v4686_v9, 7 }
  0x7f   : > { %729 = vmatmul.bf16.vlgmr.msra.gmra.mxu0 %v557_v20  ;;  %v933_v19 = vadd.s32 8, %v3797_v15  ;;  %v3806_v20 = vstv %s2687_s12  ;;  %v934_v42 = vadd.s32 16, %v3797_v15  ;;  %v935_v43 = vadd.s32 24, %v3797_v15 }
  0x80   : > { %818 = vmatmul.bf16.vlgmr.msra.gmra.mxu1 %v558_v21  ;;  %4747 = vst [vmem:[#allocation22_spill] sm:$0xff] %v3806_v20  ;;  %v966_v22 = vadd.s32 %v3806_v20, %v3797_v15  ;;  %v937_v1 = vadd.s32 40, %v3797_v15 }
  0x81   : > { %1216 = vmatpush.bf16.msra.mxu2 %v2868_v63  ;;  %v967_v23 = vadd.s32 %v3806_v20, %v933_v19  ;;  %v969_v46 = vadd.s32 %v3806_v20, %v935_v43  ;;  %v4757_v19 = vmov 0 }
  0x82   : > { %v971_v4 = vadd.s32 %v3806_v20, %v937_v1  ;;  %v546_v1 = vld [vmem:[%s3750_s21 + $0x1a8] sm:$0xff] }
  0x85   : > { %1217 = vmatpush.bf16.msra.mxu2 %v2867_v0  ;;  %v936_v0 = vadd.s32 32, %v3797_v15 }
  0x87   : > { %v970_v3 = vadd.s32 %v3806_v20, %v936_v0  ;;  %v547_v0 = vld [vmem:[%s3750_s21 + $0x1b0] sm:$0xff] }
  0x89   : > { %1218 = vmatpush.bf16.msra.mxu2 %v2866_v5 }
  0x8f   : > { %734 = vmatmul.bf16.gmra.mxu0 %v559_v26  ;;  %v3812_v26 = vstv %s483_s4  ;;  %s4587_s4 = scalar_lea.vmem [#allocation11], %s2620_s16 }
  0x90   : > { %823 = vmatmul.bf16.gmra.mxu1 %v560_v27  ;;  %4748 = vst [vmem:[#allocation23_spill] sm:$0xff] %v3812_v26  ;;  %vm999_vm0 = vcmp.lt.s32.totalorder %v966_v22, %v3812_v26  ;;  %vm1000_vm1 = vcmp.lt.s32.totalorder %v967_v23, %v3812_v26  ;;  %vm1002_vm4 = vcmp.lt.s32.totalorder %v969_v46, %v3812_v26 }
  0x91   : > { %vm3821_vm2 = vmpackc.low %vm1000_vm1, %vm999_vm0  ;;  %vm1003_vm6 = vcmp.lt.s32.totalorder %v970_v3, %v3812_v26  ;;  %vm1004_vm7 = vcmp.lt.s32.totalorder %v971_v4, %v3812_v26  ;;  %v579_v22 = vpack.c.bf16 %v539_v12, %v537_v11  ;;  %v942_v12 = vadd.s32 80, %v3797_v15 }
  0x92   : > { %v4750_v36 = vsel %vm3821_vm2, 4294967295, %v4749_v36  ;;  %vm3863_vm8 = vmpackc.low %vm1004_vm7, %vm1003_vm6 }
  0x93   : > { %4751 = vst [vmem:[#allocation24_spill] sm:$0xff] %v4750_v36  ;;  %v4758_v19 = vsel %vm3863_vm8, 4294967295, %v4757_v19 }
  0x94   : > { %4759 = vst [vmem:[#allocation28_spill] sm:$0xff] %v4758_v19 }
  0x9f   : > { %739 = vmatmul.bf16.gmra.mxu0 %v561_v32  ;;  %v530_v32 = vld [vmem:[%s3750_s21 + $0x128] sm:$0xff] }
  0xa0   : > { %828 = vmatmul.bf16.gmra.mxu1 %v562_v33  ;;  %v532_v33 = vld [vmem:[%s3750_s21 + $0x138] sm:$0xff] }
  0xaf   : > { %744 = vmatmul.bf16.gmra.mxu0 %v563_v38  ;;  %v575_v38 = vpack.c.bf16 %v531_v31, %v529_v30 }
  0xb0   : > { %833 = vmatmul.bf16.gmra.mxu1 %v564_v39  ;;  %v576_v39 = vpack.c.bf16 %v532_v33, %v530_v32 }
  0xbf   : > { %749 = vmatmul.bf16.gmra.mxu0 %v565_v44 }
  0xc0   : > { %838 = vmatmul.bf16.gmra.mxu1 %v566_v45  ;;  %v968_v45 = vadd.s32 %v3806_v20, %v934_v42  ;;  %v544_v42 = vld [vmem:[%s3750_s21 + $0x198] sm:$0xff] }
  0xc2   : > { %vm1001_vm3 = vcmp.lt.s32.totalorder %v968_v45, %v3812_v26  ;;  %v4761_v45 = vmov 0 }
  0xc3   : > { %vm3842_vm5 = vmpackc.low %vm1002_vm4, %vm1001_vm3 }
  0xc4   : > { %v4754_v58 = vsel %vm3842_vm5, 4294967295, %v4753_v58 }
  0xc5   : > { %4755 = vst [vmem:[#allocation26_spill] sm:$0xff] %v4754_v58 }
  0xcf   : > { %754 = vmatmul.bf16.gmra.mxu0 %v567_v51 }
  0xd0   : > { %843 = vmatmul.bf16.gmra.mxu1 %v568_v52  ;;  %v533_v52 = vld [vmem:[%s3750_s21 + $0x140] sm:$0xff] }
  0xdf   : > { %759 = vmatmul.bf16.gmra.mxu0 %v569_v60  ;;  %v577_v60 = vpack.c.bf16 %v535_v53, %v533_v52  ;;  %v941_v52 = vadd.s32 72, %v3797_v15 }
  0xe0   : > { %848 = vmatmul.bf16.gmra.mxu1 %v570_v61  ;;  %v578_v61 = vpack.c.bf16 %v536_v55, %v534_v54 }
  0xe1   : > { %v975_v55 = vadd.s32 %v3806_v20, %v941_v52 }
  0xe3   : > { %vm1008_vm13 = vcmp.lt.s32.totalorder %v975_v55, %v3812_v26  ;;  %v555_v55 = vld [vmem:[%s3750_s21 + $0x1f0] sm:$0xff] }
  0xef   : > { %764 = vmatmul.bf16.gmra.mxu0 %v571_v6 }
  0xf0   : > { %853 = vmatmul.bf16.gmra.mxu1 %v572_v7 }
  0xfc   : > { %v730_v16 = vpop.f32.mrf.mxu0 }
  0xfd   : > { %v819_v17 = vpop.f32.mrf.mxu1  ;;  %v731_v21 = vadd.f32 %v3802_v18, %v730_v16 }
  0xff   : > { %769 = vmatmul.bf16.gmra.mxu0 %v573_v13  ;;  %v820_v27 = vadd.f32 %v819_v17, %v731_v21  ;;  %v538_v13 = vld [vmem:[%s3750_s21 + $0x168] sm:$0xff] }
 0x100   : > { %858 = vmatmul.bf16.gmra.mxu1 %v574_v14  ;;  %v540_v14 = vld [vmem:[%s3750_s21 + $0x178] sm:$0xff] }
 0x101   : > { %v899_v34 = vmax.f32 %v820_v27, 0.0  ;;  %v580_v23 = vpack.c.bf16 %v540_v14, %v538_v13  ;;  %v938_v27 = vadd.s32 48, %v3797_v15  ;;  %v943_v13 = vadd.s32 88, %v3797_v15 }
 0x103   : > { %v972_v30 = vadd.s32 %v3806_v20, %v938_v27 }
 0x104   : > { %v732_v24 = vpop.f32.mrf.mxu0 }
 0x105   : > { %v821_v25 = vpop.f32.mrf.mxu1  ;;  %v733_v28 = vadd.f32 %v3802_v18, %v732_v24  ;;  %vm1005_vm9 = vcmp.lt.s32.totalorder %v972_v30, %v3812_v26  ;;  %v550_v30 = vld [vmem:[%s3750_s21 + $0x1c8] sm:$0xff] }
 0x107   : > { %v822_v29 = vadd.f32 %v821_v25, %v733_v28  ;;  %v939_v28 = vadd.s32 56, %v3797_v15 }
 0x109   : > { %v900_v35 = vmax.f32 %v822_v29, 0.0  ;;  %v973_v31 = vadd.s32 %v3806_v20, %v939_v28  ;;  %v549_v28 = vld [vmem:[%s3750_s21 + $0x1c0] sm:$0xff] }
 0x10b   : > { %v3825_v37 = vpack.c.bf16 %v900_v35, %v899_v34  ;;  %vm1006_vm10 = vcmp.lt.s32.totalorder %v973_v31, %v3812_v26  ;;  %v552_v31 = vld [vmem:[%s3750_s21 + $0x1d8] sm:$0xff] }
 0x10c   : > { %v735_v40 = vpop.f32.mrf.mxu0  ;;  %vm3884_vm11 = vmpackc.low %vm1006_vm10, %vm1005_vm9 }
 0x10d   : > { %4752 = vst [vmem:[#allocation25_spill] sm:$0xff] %v3825_v37  ;;  %v824_v41 = vpop.f32.mrf.mxu1  ;;  %2722 = vmatmul.msk.bf16.vlgmr.msra.gmra.mxu2 %vm3821_vm2, %v3825_v37  ;;  %v736_v44 = vadd.f32 %v3802_v18, %v735_v40  ;;  %v543_v40 = vld [vmem:[%s3750_s21 + $0x190] sm:$0xff]  ;;  %v4762_v45 = vsel %vm3884_vm11, 4294967295, %v4761_v45 }
 0x10e   : > { %4763 = vst [vmem:[#allocation30_spill] sm:$0xff] %v4762_v45 }
 0x10f   : > { %774 = vmatmul.bf16.gmra.mxu0 %v575_v38  ;;  %v825_v49 = vadd.f32 %v824_v41, %v736_v44  ;;  %v542_v41 = vld [vmem:[%s3750_s21 + $0x188] sm:$0xff] }
 0x110   : > { %863 = vmatmul.bf16.gmra.mxu1 %v576_v39  ;;  %v541_v39 = vld [vmem:[%s3750_s21 + $0x180] sm:$0xff] }
 0x111   : > { %v901_v56 = vmax.f32 %v825_v49, 0.0 }
 0x114   : > { %v737_v47 = vpop.f32.mrf.mxu0 }
 0x115   : > { %v826_v48 = vpop.f32.mrf.mxu1  ;;  %v738_v50 = vadd.f32 %v3802_v18, %v737_v47  ;;  %v581_v47 = vpack.c.bf16 %v543_v40, %v541_v39  ;;  %v586_v39 = vpack.c.bf16 %v552_v31, %v550_v30  ;;  %v949_v30 = vadd.s32 136, %v3797_v15 }
 0x117   : > { %v827_v51 = vadd.f32 %v826_v48, %v738_v50  ;;  %v582_v48 = vpack.c.bf16 %v544_v42, %v542_v41  ;;  %v944_v42 = vadd.s32 96, %v3797_v15 }
 0x119   : > { %v902_v57 = vmax.f32 %v827_v51, 0.0  ;;  %v940_v51 = vadd.s32 64, %v3797_v15 }
 0x11b   : > { %v3846_v59 = vpack.c.bf16 %v902_v57, %v901_v56  ;;  %v974_v54 = vadd.s32 %v3806_v20, %v940_v51 }
 0x11c   : > { %v740_v62 = vpop.f32.mrf.mxu0 }
 0x11d   : > { %4756 = vst [vmem:[#allocation27_spill] sm:$0xff] %v3846_v59  ;;  %v829_v63 = vpop.f32.mrf.mxu1  ;;  %2725 = vmatmul.msk.bf16.gmra.mxu2 %vm3842_vm5, %v3846_v59  ;;  %v741_v2 = vadd.f32 %v3802_v18, %v740_v62  ;;  %vm1007_vm12 = vcmp.lt.s32.totalorder %v974_v54, %v3812_v26  ;;  %v553_v54 = vld [vmem:[%s3750_s21 + $0x1e0] sm:$0xff] }
 0x11e   : > { %vm3905_vm14 = vmpackc.low %vm1008_vm13, %vm1007_vm12 }
 0x11f   : > { %779 = vmatmul.bf16.gmra.mxu0 %v577_v60  ;;  %v830_v7 = vadd.f32 %v829_v63, %v741_v2  ;;  %v545_v63 = vld [vmem:[%s3750_s21 + $0x1a0] sm:$0xff]  ;;  %v548_v2 = vld [vmem:[%s3750_s21 + $0x1b8] sm:$0xff] }
 0x120   : > { %868 = vmatmul.bf16.gmra.mxu1 %v578_v61 }
 0x121   : > { %v903_v16 = vmax.f32 %v830_v7, 0.0  ;;  %v583_v7 = vpack.c.bf16 %v547_v0, %v545_v63  ;;  %v587_v0 = vpack.c.bf16 %v555_v55, %v553_v54 }
 0x124   : > { %v742_v5 = vpop.f32.mrf.mxu0 }
 0x125   : > { %v831_v6 = vpop.f32.mrf.mxu1  ;;  %v743_v8 = vadd.f32 %v3802_v18, %v742_v5  ;;  %v4765_v5 = vmov 0 }
 0x126   : > { %v4766_v5 = vsel %vm3905_vm14, 4294967295, %v4765_v5 }
 0x127   : > { %v832_v10 = vadd.f32 %v831_v6, %v743_v8  ;;  %4767 = vst [vmem:[#allocation32_spill] sm:$0xff] %v4766_v5  ;;  %v584_v8 = vpack.c.bf16 %v548_v2, %v546_v1 }
 0x129   : > { %v904_v17 = vmax.f32 %v832_v10, 0.0 }
 0x12b   : > { %v3867_v21 = vpack.c.bf16 %v904_v17, %v903_v16  ;;  %v976_v16 = vadd.s32 %v3806_v20, %v942_v12  ;;  %v977_v17 = vadd.s32 %v3806_v20, %v943_v13 }
 0x12c   : > { %v745_v24 = vpop.f32.mrf.mxu0 }
 0x12d   : > { %4760 = vst [vmem:[#allocation29_spill] sm:$0xff] %v3867_v21  ;;  %v834_v25 = vpop.f32.mrf.mxu1  ;;  %2728 = vmatmul.msk.bf16.gmra.mxu2 %vm3863_vm8, %v3867_v21  ;;  %v746_v29 = vadd.f32 %v3802_v18, %v745_v24  ;;  %vm1009_vm15 = vcmp.lt.s32.totalorder %v976_v16, %v3812_v26  ;;  %vm1010_vm0 = vcmp.lt.s32.totalorder %v977_v17, %v3812_v26 }
 0x12e   : > { %vm3926_vm1 = vmpackc.low %vm1010_vm0, %vm1009_vm15 }
 0x12f   : > { %784 = vmatmul.bf16.gmra.mxu0 %v579_v22  ;;  %v835_v34 = vadd.f32 %v834_v25, %v746_v29  ;;  %v551_v29 = vld [vmem:[%s3750_s21 + $0x1d0] sm:$0xff] }
 0x130   : > { %873 = vmatmul.bf16.gmra.mxu1 %v580_v23 }
 0x131   : > { %v905_v43 = vmax.f32 %v835_v34, 0.0  ;;  %v4769_v34 = vmov 0 }
 0x132   : > { %v4770_v34 = vsel %vm3926_vm1, 4294967295, %v4769_v34 }
 0x133   : > { %4771 = vst [vmem:[#allocation34_spill] sm:$0xff] %v4770_v34 }
 0x134   : > { %v747_v32 = vpop.f32.mrf.mxu0 }
 0x135   : > { %v836_v33 = vpop.f32.mrf.mxu1  ;;  %v748_v35 = vadd.f32 %v3802_v18, %v747_v32 }
 0x137   : > { %v837_v38 = vadd.f32 %v836_v33, %v748_v35 }
 0x139   : > { %v906_v44 = vmax.f32 %v837_v38, 0.0  ;;  %v585_v38 = vpack.c.bf16 %v551_v29, %v549_v28  ;;  %v948_v29 = vadd.s32 128, %v3797_v15 }
 0x13b   : > { %v3888_v46 = vpack.c.bf16 %v906_v44, %v905_v43  ;;  %v945_v43 = vadd.s32 104, %v3797_v15 }
 0x13c   : > { %v750_v49 = vpop.f32.mrf.mxu0 }
 0x13d   : > { %4764 = vst [vmem:[#allocation31_spill] sm:$0xff] %v3888_v46  ;;  %v839_v50 = vpop.f32.mrf.mxu1  ;;  %2731 = vmatmul.msk.bf16.gmra.mxu2 %vm3884_vm11, %v3888_v46  ;;  %v751_v53 = vadd.f32 %v3802_v18, %v750_v49 }
 0x13f   : > { %789 = vmatmul.bf16.gmra.mxu0 %v581_v47  ;;  %v840_v60 = vadd.f32 %v839_v50, %v751_v53  ;;  %v978_v47 = vadd.s32 %v3806_v20, %v944_v42 }
 0x140   : > { %878 = vmatmul.bf16.gmra.mxu1 %v582_v48  ;;  %v979_v48 = vadd.s32 %v3806_v20, %v945_v43 }
 0x141   : > { %v907_v3 = vmax.f32 %v840_v60, 0.0  ;;  %vm1011_vm3 = vcmp.lt.s32.totalorder %v978_v47, %v3812_v26  ;;  %v4781_v47 = vmov 0 }
 0x142   : > { %vm1012_vm4 = vcmp.lt.s32.totalorder %v979_v48, %v3812_v26 }
 0x143   : > { %vm3947_vm6 = vmpackc.low %vm1012_vm4, %vm1011_vm3 }
 0x144   : > { %v752_v56 = vpop.f32.mrf.mxu0 }
 0x145   : > { %v841_v57 = vpop.f32.mrf.mxu1  ;;  %v753_v61 = vadd.f32 %v3802_v18, %v752_v56  ;;  %v554_v56 = vld [vmem:[%s3750_s21 + $0x1e8] sm:$0xff] }
 0x147   : > { %v842_v62 = vadd.f32 %v841_v57, %v753_v61  ;;  %v556_v57 = vld [vmem:[%s3750_s21 + $0x1f8] sm:$0xff]  ;;  %s4585_s21 = scalar_lea.vmem %s4677_s10, %s2621_s28  ;;  %s2399_s28 = sshll.u32 %s2395_s0, 4  ;;  %s2400_s28 = int_to_ptr.hbm [resolvable:$true] %s2399_s28 }
 0x148   : > { %v588_v1 = vpack.c.bf16 %v556_v57, %v554_v56 }
 0x149   : > { %v908_v4 = vmax.f32 %v842_v62, 0.0  ;;  %v4773_v62 = vmov 0 }
 0x14a   : > { %v4774_v62 = vsel %vm3947_vm6, 4294967295, %v4773_v62 }
 0x14b   : > { %v3909_v6 = vpack.c.bf16 %v908_v4, %v907_v3  ;;  %4775 = vst [vmem:[#allocation36_spill] sm:$0xff] %v4774_v62  ;;  %v946_v4 = vadd.s32 112, %v3797_v15 }
 0x14c   : > { %v755_v10 = vpop.f32.mrf.mxu0 }
 0x14d   : > { %4768 = vst [vmem:[#allocation33_spill] sm:$0xff] %v3909_v6  ;;  %v844_v11 = vpop.f32.mrf.mxu1  ;;  %2734 = vmatmul.msk.bf16.gmra.mxu2 %vm3905_vm14, %v3909_v6  ;;  %v756_v14 = vadd.f32 %v3802_v18, %v755_v10  ;;  %v980_v10 = vadd.s32 %v3806_v20, %v946_v4 }
 0x14f   : > { %794 = vmatmul.bf16.gmra.mxu0 %v583_v7  ;;  %v845_v24 = vadd.f32 %v844_v11, %v756_v14  ;;  %v947_v7 = vadd.s32 120, %v3797_v15  ;;  %vm1013_vm7 = vcmp.lt.s32.totalorder %v980_v10, %v3812_v26 }
 0x150   : > { %883 = vmatmul.bf16.gmra.mxu1 %v584_v8 }
 0x151   : > { %v909_v32 = vmax.f32 %v845_v24, 0.0  ;;  %v981_v11 = vadd.s32 %v3806_v20, %v947_v7  ;;  %v4777_v24 = vmov 0 }
 0x153   : > { %vm1014_vm9 = vcmp.lt.s32.totalorder %v981_v11, %v3812_v26 }
 0x154   : > { %v757_v22 = vpop.f32.mrf.mxu0  ;;  %vm3964_vm10 = vmpackc.low %vm1014_vm9, %vm1013_vm7 }
 0x155   : > { %v846_v23 = vpop.f32.mrf.mxu1  ;;  %v758_v25 = vadd.f32 %v3802_v18, %v757_v22  ;;  %v4778_v24 = vsel %vm3964_vm10, 4294967295, %v4777_v24 }
 0x156   : > { %4779 = vst [vmem:[#allocation38_spill] sm:$0xff] %v4778_v24 }
 0x157   : > { %v847_v27 = vadd.f32 %v846_v23, %v758_v25 }
 0x159   : > { %v910_v33 = vmax.f32 %v847_v27, 0.0 }
 0x15b   : > { %v3930_v35 = vpack.c.bf16 %v910_v33, %v909_v32  ;;  %v982_v32 = vadd.s32 %v3806_v20, %v948_v29  ;;  %v983_v33 = vadd.s32 %v3806_v20, %v949_v30  ;;  %v952_v30 = vadd.s32 160, %v3797_v15 }
 0x15c   : > { %v760_v40 = vpop.f32.mrf.mxu0 }
 0x15d   : > { %4772 = vst [vmem:[#allocation35_spill] sm:$0xff] %v3930_v35  ;;  %v849_v41 = vpop.f32.mrf.mxu1  ;;  %2737 = vmatmul.msk.bf16.gmra.mxu2 %vm3926_vm1, %v3930_v35  ;;  %v761_v44 = vadd.f32 %v3802_v18, %v760_v40  ;;  %vm1015_vm12 = vcmp.lt.s32.totalorder %v982_v32, %v3812_v26  ;;  %vm1016_vm13 = vcmp.lt.s32.totalorder %v983_v33, %v3812_v26 }
 0x15e   : > { %vm3981_vm15 = vmpackc.low %vm1016_vm13, %vm1015_vm12 }
 0x15f   : > { %799 = vmatmul.bf16.gmra.mxu0 %v585_v38  ;;  %v850_v51 = vadd.f32 %v849_v41, %v761_v44  ;;  %v4782_v47 = vsel %vm3981_vm15, 4294967295, %v4781_v47 }
 0x160   : > { %888 = vmatmul.bf16.gmra.mxu1 %v586_v39  ;;  %4783 = vst [vmem:[#allocation40_spill] sm:$0xff] %v4782_v47 }
 0x161   : > { %v911_v60 = vmax.f32 %v850_v51, 0.0  ;;  %v3993_v51 = vld [vmem:[%s4672_s5] ss:$0 sm:$0xff] }
 0x164   : > { %v762_v49 = vpop.f32.mrf.mxu0 }
 0x165   : > { %v851_v50 = vpop.f32.mrf.mxu1  ;;  %v763_v52 = vadd.f32 %v3802_v18, %v762_v49 }
 0x167   : > { %v852_v53 = vadd.f32 %v851_v50, %v763_v52  ;;  %v950_v52 = vadd.s32 144, %v3797_v15 }
 0x169   : > { %v912_v61 = vmax.f32 %v852_v53, 0.0  ;;  %v951_v53 = vadd.s32 152, %v3797_v15 }
 0x16b   : > { %v3951_v63 = vpack.c.bf16 %v912_v61, %v911_v60  ;;  %v984_v60 = vadd.s32 %v3806_v20, %v950_v52  ;;  %v985_v61 = vadd.s32 %v3806_v20, %v951_v53 }
 0x16c   : > { %v765_v2 = vpop.f32.mrf.mxu0 }
 0x16d   : > { %4776 = vst [vmem:[#allocation37_spill] sm:$0xff] %v3951_v63  ;;  %v854_v3 = vpop.f32.mrf.mxu1  ;;  %2740 = vmatmul.msk.bf16.gmra.mxu2 %vm3947_vm6, %v3951_v63  ;;  %v766_v8 = vadd.f32 %v3802_v18, %v765_v2  ;;  %vm1017_vm0 = vcmp.lt.s32.totalorder %v984_v60, %v3812_v26  ;;  %vm1018_vm3 = vcmp.lt.s32.totalorder %v985_v61, %v3812_v26 }
 0x16e   : > { %vm4008_vm4 = vmpackc.low %vm1018_vm3, %vm1017_vm0 }
 0x16f   : > { %804 = vmatmul.bf16.gmra.mxu0 %v587_v0  ;;  %v855_v14 = vadd.f32 %v854_v3, %v766_v8 }
 0x170   : > { %893 = vmatmul.bf16.gmra.mxu1 %v588_v1 }
 0x171   : > { %v913_v22 = vmax.f32 %v855_v14, 0.0 }
 0x174   : > { %v767_v12 = vpop.f32.mrf.mxu0 }
 0x175   : > { %v856_v13 = vpop.f32.mrf.mxu1  ;;  %v768_v16 = vadd.f32 %v3802_v18, %v767_v12 }
 0x177   : > { %v857_v17 = vadd.f32 %v856_v13, %v768_v16  ;;  %v4785_v16 = vmov 0 }
 0x178   : > { %v4786_v16 = vsel %vm4008_vm4, 4294967295, %v4785_v16 }
 0x179   : > { %v914_v23 = vmax.f32 %v857_v17, 0.0  ;;  %4787 = vst [vmem:[#allocation42_spill] sm:$0xff] %v4786_v16 }
 0x17b   : > { %v3968_v25 = vpack.c.bf16 %v914_v23, %v913_v22 }
 0x17c   : > { %v770_v27 = vpop.f32.mrf.mxu0 }
 0x17d   : > { %4780 = vst [vmem:[#allocation39_spill] sm:$0xff] %v3968_v25  ;;  %v859_v28 = vpop.f32.mrf.mxu1  ;;  %2743 = vmatmul.msk.bf16.gmra.mxu2 %vm3964_vm10, %v3968_v25  ;;  %v771_v31 = vadd.f32 %v3802_v18, %v770_v27 }
 0x17f   : > { %v860_v40 = vadd.f32 %v859_v28, %v771_v31  ;;  %v953_v31 = vadd.s32 168, %v3797_v15 }
 0x181   : > { %v915_v43 = vmax.f32 %v860_v40, 0.0 }
 0x184   : > { %v772_v38 = vpop.f32.mrf.mxu0 }
 0x185   : > { %v861_v39 = vpop.f32.mrf.mxu1  ;;  %v773_v41 = vadd.f32 %v3802_v18, %v772_v38 }
 0x187   : > { %v862_v42 = vadd.f32 %v861_v39, %v773_v41 }
 0x189   : > { %v916_v44 = vmax.f32 %v862_v42, 0.0 }
 0x18b   : > { %v3985_v48 = vpack.c.bf16 %v916_v44, %v915_v43  ;;  %v986_v43 = vadd.s32 %v3806_v20, %v952_v30  ;;  %v987_v44 = vadd.s32 %v3806_v20, %v953_v31 }
 0x18c   : > { %v775_v49 = vpop.f32.mrf.mxu0 }
 0x18d   : > { %4784 = vst [vmem:[#allocation41_spill] sm:$0xff] %v3985_v48  ;;  %v864_v50 = vpop.f32.mrf.mxu1  ;;  %2746 = vmatmul.msk.bf16.gmra.mxu2 %vm3981_vm15, %v3985_v48  ;;  %v776_v55 = vadd.f32 %v3802_v18, %v775_v49  ;;  %vm1019_vm7 = vcmp.lt.s32.totalorder %v986_v43, %v3812_v26  ;;  %vm1020_vm9 = vcmp.lt.s32.totalorder %v987_v44, %v3812_v26 }
 0x18e   : > { %vm4033_vm12 = vmpackc.low %vm1020_vm9, %vm1019_vm7 }
 0x18f   : > { %v865_v2 = vadd.f32 %v864_v50, %v776_v55 }
 0x190   : > { %v1220_v54 = vpop.f32.mrf.mxu2 }
 0x191   : > { %v1221_v56 = vadd.f32 %v3993_v51, %v1220_v54  ;;  %v917_v11 = vmax.f32 %v865_v2, 0.0 }
 0x193   : > { %v3999_v57 = vpack.c.bf16 %v1221_v56, %v1221_v56 }
 0x194   : > { %v777_v0 = vpop.f32.mrf.mxu0 }
 0x195   : > { %v866_v1 = vpop.f32.mrf.mxu1  ;;  %v1428_v3 = vxor.u32 2147516416, %v3999_v57  ;;  %v778_v4 = vadd.f32 %v3802_v18, %v777_v0 }
 0x197   : > { %v1460_v7 = vunpack.c.l.bf16 %v1428_v3  ;;  %v867_v8 = vadd.f32 %v866_v1, %v778_v4 }
 0x198   : > { %v1222_v10 = vpop.f32.mrf.mxu2 }
 0x199   : > { %v1492_v12 = vmul.f32 1.442695, %v1460_v7  ;;  %v918_v13 = vmax.f32 %v867_v8, 0.0  ;;  %v1223_v14 = vadd.f32 %v3993_v51, %v1222_v10 }
 0x19b   : > { %3054 = vpow2.f32 %v1492_v12  ;;  %v4012_v17 = vpack.c.bf16 %v918_v13, %v917_v11  ;;  %v4014_v22 = vpack.c.bf16 %v1223_v14, %v1223_v14  ;;  %v4789_v11 = vmov 0 }
 0x19c   : > { %v780_v23 = vpop.f32.mrf.mxu0  ;;  %v4790_v11 = vsel %vm4033_vm12, 4294967295, %v4789_v11 }
 0x19d   : > { %4788 = vst [vmem:[#allocation43_spill] sm:$0xff] %v4012_v17  ;;  %v869_v27 = vpop.f32.mrf.mxu1  ;;  %v1429_v28 = vxor.u32 2147516416, %v4014_v22  ;;  %2749 = vmatmul.msk.bf16.gmra.mxu2 %vm4008_vm4, %v4012_v17  ;;  %v781_v39 = vadd.f32 %v3802_v18, %v780_v23 }
 0x19e   : > { %4791 = vst [vmem:[#allocation44_spill] sm:$0xff] %v4790_v11 }
 0x19f   : > { %v1461_v29 = vunpack.c.l.bf16 %v1429_v28  ;;  %v870_v53 = vadd.f32 %v869_v27, %v781_v39 }
 0x1a0   : > { %v1225_v32 = vpop.f32.mrf.mxu2 }
 0x1a1   : > { %v3055_v33 = vpop.eup %3054  ;;  %v1494_v38 = vmul.f32 1.442695, %v1461_v29  ;;  %v1226_v40 = vadd.f32 %v3993_v51, %v1225_v32  ;;  %v919_v3 = vmax.f32 %v870_v53, 0.0 }
 0x1a2   : > { %v1556_v41 = vpack.c.bf16 %v3055_v33, %v3055_v33  ;;  %v954_v33 = vadd.s32 176, %v3797_v15 }
 0x1a3   : > { %3056 = vpow2.f32 %v1494_v38  ;;  %v4024_v42 = vpack.c.bf16 %v1226_v40, %v1226_v40  ;;  %v955_v38 = vadd.s32 184, %v3797_v15 }
 0x1a4   : > { %v1588_v49 = vunpack.c.l.bf16 %v1556_v41  ;;  %v782_v50 = vpop.f32.mrf.mxu0 }
 0x1a5   : > { %v871_v52 = vpop.f32.mrf.mxu1  ;;  %v1430_v54 = vxor.u32 2147516416, %v4024_v42  ;;  %v783_v55 = vadd.f32 %v3802_v18, %v782_v50 }
 0x1a6   : > { %v1620_v56 = vadd.f32 1.0, %v1588_v49 }
 0x1a7   : > { %v1462_v60 = vunpack.c.l.bf16 %v1430_v54  ;;  %v872_v61 = vadd.f32 %v871_v52, %v783_v55  ;;  %v988_v55 = vadd.s32 %v3806_v20, %v954_v33 }
 0x1a8   : > { %v1652_v0 = vpack.c.bf16 %v1620_v56, %v1620_v56  ;;  %v1227_v1 = vpop.f32.mrf.mxu2  ;;  %v989_v56 = vadd.s32 %v3806_v20, %v955_v38 }
 0x1a9   : > { %v3057_v2 = vpop.eup %3056  ;;  %v1496_v4 = vmul.f32 1.442695, %v1462_v60  ;;  %v920_v7 = vmax.f32 %v872_v61, 0.0  ;;  %v1228_v8 = vadd.f32 %v3993_v51, %v1227_v1  ;;  %vm1021_vm13 = vcmp.lt.s32.totalorder %v988_v55, %v3812_v26 }
 0x1aa   : > { %v1557_v10 = vpack.c.bf16 %v3057_v2, %v3057_v2  ;;  %v1686_v12 = vunpack.c.h.bf16 %v1652_v0  ;;  %v1687_v23 = vunpack.c.l.bf16 %v1652_v0  ;;  %vm1022_vm0 = vcmp.lt.s32.totalorder %v989_v56, %v3812_v26 }
 0x1ab   : > { %3058 = vpow2.f32 %v1496_v4  ;;  %v4037_v13 = vpack.c.bf16 %v920_v7, %v919_v3  ;;  %v4039_v14 = vpack.c.bf16 %v1228_v8, %v1228_v8  ;;  %v3544_v7 = vmov 1065369472   ;;  %vm4063_vm3 = vmpackc.low %vm1022_vm0, %vm1021_vm13 }
 0x1ac   : > { %v1589_v27 = vunpack.c.l.bf16 %v1557_v10  ;;  %v785_v28 = vpop.f32.mrf.mxu0  ;;  %3060 = vrcp.f32 %v1686_v12  ;;  %v4055_v8 = vunpack.c.l.bf16 %v3544_v7 }
 0x1ad   : > { %4792 = vst [vmem:[#allocation45_spill] sm:$0xff] %v4037_v13  ;;  %v874_v29 = vpop.f32.mrf.mxu1  ;;  %v1431_v30 = vxor.u32 2147516416, %v4039_v14  ;;  %2752 = vmatmul.msk.bf16.gmra.mxu2 %vm4033_vm12, %v4037_v13  ;;  %3062 = vrcp.f32 %v1687_v23  ;;  %v786_v40 = vadd.f32 %v3802_v18, %v785_v28 }
 0x1ae   : > { %v1621_v31 = vadd.f32 1.0, %v1589_v27 }
 0x1af   : > { %v1463_v32 = vunpack.c.l.bf16 %v1431_v30  ;;  %v875_v61 = vadd.f32 %v874_v29, %v786_v40 }
 0x1b0   : > { %v1653_v39 = vpack.c.bf16 %v1621_v31, %v1621_v31  ;;  %v1230_v41 = vpop.f32.mrf.mxu2 }
 0x1b1   : > { %v3059_v43 = vpop.eup %3058  ;;  %v1498_v44 = vmul.f32 1.442695, %v1463_v32  ;;  %v1231_v49 = vadd.f32 %v3993_v51, %v1230_v41  ;;  %v921_v29 = vmax.f32 %v875_v61, 0.0 }
 0x1b2   : > { %v1693_v50 = vunpack.c.h.bf16 %v1653_v39  ;;  %v1694_v52 = vunpack.c.l.bf16 %v1653_v39  ;;  %v1558_v53 = vpack.c.bf16 %v3059_v43, %v3059_v43  ;;  %v3061_v2 = vpop.eup %3060  ;;  %v4793_v43 = vmov 0 }
 0x1b3   : > { %3064 = vpow2.f32 %v1498_v44  ;;  %v4049_v54 = vpack.c.bf16 %v1231_v49, %v1231_v49  ;;  %v3063_v10 = vpop.eup %3062  ;;  %v4794_v43 = vsel %vm4063_vm3, 4294967295, %v4793_v43 }
 0x1b4   : > { %3066 = vrcp.f32 %v1693_v50  ;;  %v1590_v60 = vunpack.c.l.bf16 %v1558_v53  ;;  %v787_v0 = vpop.f32.mrf.mxu0  ;;  %v4061_v39 = vmul.f32 %v3063_v10, %v4055_v8  ;;  %4795 = vst [vmem:[#allocation46_spill] sm:$0xff] %v4794_v43 }
 0x1b5   : > { %v876_v1 = vpop.f32.mrf.mxu1  ;;  %3068 = vrcp.f32 %v1694_v52  ;;  %v1432_v3 = vxor.u32 2147516416, %v4049_v54  ;;  %v788_v4 = vadd.f32 %v3802_v18, %v787_v0 }
 0x1b6   : > { %v1622_v12 = vadd.f32 1.0, %v1590_v60 }
 0x1b7   : > { %v1464_v23 = vunpack.c.l.bf16 %v1432_v3  ;;  %v877_v27 = vadd.f32 %v876_v1, %v788_v4  ;;  %v956_v3 = vadd.s32 192, %v3797_v15  ;;  %v957_v4 = vadd.s32 200, %v3797_v15 }
 0x1b8   : > { %v1654_v28 = vpack.c.bf16 %v1622_v12, %v1622_v12  ;;  %v1232_v30 = vpop.f32.mrf.mxu2 }
 0x1b9   : > { %v3065_v31 = vpop.eup %3064  ;;  %v1500_v32 = vmul.f32 1.442695, %v1464_v23  ;;  %v922_v33 = vmax.f32 %v877_v27, 0.0  ;;  %v1233_v38 = vadd.f32 %v3993_v51, %v1232_v30 }
 0x1ba   : > { %v3067_v40 = vpop.eup %3066  ;;  %v1559_v41 = vpack.c.bf16 %v3065_v31, %v3065_v31  ;;  %v1700_v49 = vunpack.c.h.bf16 %v1654_v28  ;;  %v1701_v53 = vunpack.c.l.bf16 %v1654_v28 }
 0x1bb   : > { %v3069_v44 = vpop.eup %3068  ;;  %3070 = vpow2.f32 %v1500_v32  ;;  %v4067_v50 = vpack.c.bf16 %v922_v33, %v921_v29  ;;  %v4069_v52 = vpack.c.bf16 %v1233_v38, %v1233_v38  ;;  %v990_v33 = vadd.s32 %v3806_v20, %v956_v3 }
 0x1bc   : > { %v1591_v55 = vunpack.c.l.bf16 %v1559_v41  ;;  %v790_v56 = vpop.f32.mrf.mxu0  ;;  %v4076_v1 = vmul.f32 %v3069_v44, %v4055_v8  ;;  %3072 = vrcp.f32 %v1700_v49  ;;  %v991_v38 = vadd.s32 %v3806_v20, %v957_v4 }
 0x1bd   : > { %4796 = vst [vmem:[#allocation47_spill] sm:$0xff] %v4067_v50  ;;  %v879_v60 = vpop.f32.mrf.mxu1  ;;  %v1433_v61 = vxor.u32 2147516416, %v4069_v52  ;;  %2755 = vmatmul.msk.bf16.gmra.mxu2 %vm4063_vm3, %v4067_v50  ;;  %3074 = vrcp.f32 %v1701_v53  ;;  %v791_v10 = vadd.f32 %v3802_v18, %v790_v56  ;;  %vm1023_vm7 = vcmp.lt.s32.totalorder %v990_v33, %v3812_v26 }
 0x1be   : > { %v1623_v0 = vadd.f32 1.0, %v1591_v55  ;;  %vm1024_vm9 = vcmp.lt.s32.totalorder %v991_v38, %v3812_v26 }
 0x1bf   : > { %v1465_v2 = vunpack.c.l.bf16 %v1433_v61  ;;  %v880_v41 = vadd.f32 %v879_v60, %v791_v10  ;;  %vm4096_vm13 = vmpackc.low %vm1024_vm9, %vm1023_vm7 }
 0x1c0   : > { %v1655_v7 = vpack.c.bf16 %v1623_v0, %v1623_v0  ;;  %v1235_v12 = vpop.f32.mrf.mxu2 }
 0x1c1   : > { %v3071_v23 = vpop.eup %3070  ;;  %v1502_v27 = vmul.f32 1.442695, %v1465_v2  ;;  %v1236_v28 = vadd.f32 %v3993_v51, %v1235_v12  ;;  %v923_v4 = vmax.f32 %v880_v41, 0.0 }
 0x1c2   : > { %v1707_v29 = vunpack.c.h.bf16 %v1655_v7  ;;  %v1708_v30 = vunpack.c.l.bf16 %v1655_v7  ;;  %v1560_v31 = vpack.c.bf16 %v3071_v23, %v3071_v23  ;;  %v3073_v55 = vpop.eup %3072 }
 0x1c3   : > { %3076 = vpow2.f32 %v1502_v27  ;;  %v4082_v32 = vpack.c.bf16 %v1236_v28, %v1236_v28  ;;  %v3075_v0 = vpop.eup %3074 }
 0x1c4   : > { %3078 = vrcp.f32 %v1707_v29  ;;  %v1592_v40 = vunpack.c.l.bf16 %v1560_v31  ;;  %v792_v44 = vpop.f32.mrf.mxu0  ;;  %v4094_v29 = vmul.f32 %v3075_v0, %v4055_v8 }
 0x1c5   : > { %v881_v49 = vpop.f32.mrf.mxu1  ;;  %3080 = vrcp.f32 %v1708_v30  ;;  %v1434_v56 = vxor.u32 2147516416, %v4082_v32  ;;  %v793_v61 = vadd.f32 %v3802_v18, %v792_v44 }
 0x1c6   : > { %v1624_v2 = vadd.f32 1.0, %v1592_v40  ;;  %v4797_v40 = vmov 0 }
 0x1c7   : > { %v1466_v7 = vunpack.c.l.bf16 %v1434_v56  ;;  %v882_v3 = vadd.f32 %v881_v49, %v793_v61  ;;  %v4798_v40 = vsel %vm4096_vm13, 4294967295, %v4797_v40 }
 0x1c8   : > { %v1656_v60 = vpack.c.bf16 %v1624_v2, %v1624_v2  ;;  %v1237_v10 = vpop.f32.mrf.mxu2  ;;  %4799 = vst [vmem:[#allocation48_spill] sm:$0xff] %v4798_v40 }
 0x1c9   : > { %v3077_v12 = vpop.eup %3076  ;;  %v1504_v23 = vmul.f32 1.442695, %v1466_v7  ;;  %v924_v27 = vmax.f32 %v882_v3, 0.0  ;;  %v1238_v28 = vadd.f32 %v3993_v51, %v1237_v10  ;;  %v959_v10 = vadd.s32 216, %v3797_v15 }
 0x1ca   : > { %v3079_v30 = vpop.eup %3078  ;;  %v1561_v31 = vpack.c.bf16 %v3077_v12, %v3077_v12  ;;  %v1714_v44 = vunpack.c.h.bf16 %v1656_v60  ;;  %v1715_v49 = vunpack.c.l.bf16 %v1656_v60 }
 0x1cb   : > { %v3081_v33 = vpop.eup %3080  ;;  %3082 = vpow2.f32 %v1504_v23  ;;  %v4100_v38 = vpack.c.bf16 %v924_v27, %v923_v4  ;;  %v4102_v41 = vpack.c.bf16 %v1238_v28, %v1238_v28  ;;  %v958_v4 = vadd.s32 208, %v3797_v15 }
 0x1cc   : > { %v1593_v55 = vunpack.c.l.bf16 %v1561_v31  ;;  %v795_v56 = vpop.f32.mrf.mxu0  ;;  %v4109_v7 = vmul.f32 %v3081_v33, %v4055_v8  ;;  %3084 = vrcp.f32 %v1714_v44 }
 0x1cd   : > { %4800 = vst [vmem:[#allocation49_spill] sm:$0xff] %v4100_v38  ;;  %v884_v61 = vpop.f32.mrf.mxu1  ;;  %v1435_v0 = vxor.u32 2147516416, %v4102_v41  ;;  %2758 = vmatmul.msk.bf16.gmra.mxu2 %vm4096_vm13, %v4100_v38  ;;  %3086 = vrcp.f32 %v1715_v49  ;;  %v796_v12 = vadd.f32 %v3802_v18, %v795_v56  ;;  %v992_v44 = vadd.s32 %v3806_v20, %v958_v4 }
 0x1ce   : > { %v1625_v2 = vadd.f32 1.0, %v1593_v55 }
 0x1cf   : > { %v1467_v3 = vunpack.c.l.bf16 %v1435_v0  ;;  %v993_v0 = vadd.s32 %v3806_v20, %v959_v10  ;;  %vm1025_vm0 = vcmp.lt.s32.totalorder %v992_v44, %v3812_v26 }
 0x1d0   : > { %v1657_v60 = vpack.c.bf16 %v1625_v2, %v1625_v2  ;;  %v1240_v23 = vpop.f32.mrf.mxu2  ;;  %v885_v2 = vadd.f32 %v884_v61, %v796_v12 }
 0x1d1   : > { %v3083_v27 = vpop.eup %3082  ;;  %v1506_v28 = vmul.f32 1.442695, %v1467_v3  ;;  %v1241_v30 = vadd.f32 %v3993_v51, %v1240_v23  ;;  %vm1026_vm7 = vcmp.lt.s32.totalorder %v993_v0, %v3812_v26 }
 0x1d2   : > { %v1721_v31 = vunpack.c.h.bf16 %v1657_v60  ;;  %v1722_v55 = vunpack.c.l.bf16 %v1657_v60  ;;  %v1562_v9 = vpack.c.bf16 %v3083_v27, %v3083_v27  ;;  %v3085_v47 = vpop.eup %3084  ;;  %v925_v61 = vmax.f32 %v885_v2, 0.0  ;;  %vm4129_vm9 = vmpackc.low %vm1026_vm7, %vm1025_vm0 }
 0x1d3   : > { %3088 = vpow2.f32 %v1506_v28  ;;  %v4115_v33 = vpack.c.bf16 %v1241_v30, %v1241_v30  ;;  %v3087_v27 = vpop.eup %3086 }
 0x1d4   : > { %3090 = vrcp.f32 %v1721_v31  ;;  %v1594_v49 = vunpack.c.l.bf16 %v1562_v9  ;;  %v797_v53 = vpop.f32.mrf.mxu0 }
 0x1d5   : > { %v886_v56 = vpop.f32.mrf.mxu1  ;;  %3092 = vrcp.f32 %v1722_v55  ;;  %v1436_v60 = vxor.u32 2147516416, %v4115_v33  ;;  %v798_v23 = vadd.f32 %v3802_v18, %v797_v53  ;;  %v4127_v55 = vmul.f32 %v3087_v27, %v4055_v8 }
 0x1d6   : > { %v1626_v28 = vadd.f32 1.0, %v1594_v49 }
 0x1d7   : > { %v1468_v30 = vunpack.c.l.bf16 %v1436_v60  ;;  %v887_v4 = vadd.f32 %v886_v56, %v798_v23  ;;  %v4801_v56 = vmov 0 }
 0x1d8   : > { %v1658_v9 = vpack.c.bf16 %v1626_v28, %v1626_v28  ;;  %v1242_v10 = vpop.f32.mrf.mxu2  ;;  %v4802_v56 = vsel %vm4129_vm9, 4294967295, %v4801_v56 }
 0x1d9   : > { %v3089_v12 = vpop.eup %3088  ;;  %v1508_v31 = vmul.f32 1.442695, %v1468_v30  ;;  %v926_v3 = vmax.f32 %v887_v4, 0.0  ;;  %v1243_v47 = vadd.f32 %v3993_v51, %v1242_v10  ;;  %4803 = vst [vmem:[#allocation50_spill] sm:$0xff] %v4802_v56 }
 0x1da   : > { %v3091_v53 = vpop.eup %3090  ;;  %v1728_v48 = vunpack.c.h.bf16 %v1658_v9  ;;  %v1563_v49 = vpack.c.bf16 %v3089_v12, %v3089_v12  ;;  %v1729_v0 = vunpack.c.l.bf16 %v1658_v9 }
 0x1db   : > { %v3093_v44 = vpop.eup %3092  ;;  %3094 = vpow2.f32 %v1508_v31  ;;  %v4133_v2 = vpack.c.bf16 %v926_v3, %v925_v61  ;;  %v4135_v60 = vpack.c.bf16 %v1243_v47, %v1243_v47  ;;  %v960_v3 = vadd.s32 224, %v3797_v15 }
 0x1dc   : > { %v1595_v23 = vunpack.c.l.bf16 %v1563_v49  ;;  %v800_v28 = vpop.f32.mrf.mxu0  ;;  %3096 = vrcp.f32 %v1728_v48  ;;  %v4142_v10 = vmul.f32 %v3093_v44, %v4055_v8  ;;  %v961_v61 = vadd.s32 232, %v3797_v15 }
 0x1dd   : > { %4804 = vst [vmem:[#allocation51_spill] sm:$0xff] %v4133_v2  ;;  %v889_v30 = vpop.f32.mrf.mxu1  ;;  %v1437_v27 = vxor.u32 2147516416, %v4135_v60  ;;  %2761 = vmatmul.msk.bf16.gmra.mxu2 %vm4129_vm9, %v4133_v2  ;;  %3098 = vrcp.f32 %v1729_v0  ;;  %v801_v49 = vadd.f32 %v3802_v18, %v800_v28  ;;  %v994_v0 = vadd.s32 %v3806_v20, %v960_v3 }
 0x1de   : > { %v1627_v4 = vadd.f32 1.0, %v1595_v23 }
 0x1df   : > { %v1469_v9 = vunpack.c.l.bf16 %v1437_v27  ;;  %v995_v27 = vadd.s32 %v3806_v20, %v961_v61  ;;  %vm1027_vm0 = vcmp.lt.s32.totalorder %v994_v0, %v3812_v26 }
 0x1e0   : > { %v1659_v12 = vpack.c.bf16 %v1627_v4, %v1627_v4  ;;  %v1245_v31 = vpop.f32.mrf.mxu2 }
 0x1e1   : > { %v3095_v47 = vpop.eup %3094  ;;  %v1510_v53 = vmul.f32 1.442695, %v1469_v9  ;;  %v1246_v16 = vadd.f32 %v3993_v51, %v1245_v31  ;;  %v890_v9 = vadd.f32 %v889_v30, %v801_v49  ;;  %vm1028_vm7 = vcmp.lt.s32.totalorder %v995_v27, %v3812_v26 }
 0x1e2   : > { %v1735_v17 = vunpack.c.h.bf16 %v1659_v12  ;;  %v1736_v48 = vunpack.c.l.bf16 %v1659_v12  ;;  %v1564_v23 = vpack.c.bf16 %v3095_v47, %v3095_v47  ;;  %v3097_v11 = vpop.eup %3096  ;;  %vm4164_vm15 = vmpackc.low %vm1028_vm7, %vm1027_vm0 }
 0x1e3   : > { %3100 = vpow2.f32 %v1510_v53  ;;  %v4148_v44 = vpack.c.bf16 %v1246_v16, %v1246_v16  ;;  %v3099_v28 = vpop.eup %3098  ;;  %v3316_v16 = vld [vmem:[%s4670_s3] ss:$0 sm:$0xff]  ;;  %v927_v49 = vmax.f32 %v890_v9, 0.0 }
 0x1e4   : > { %3102 = vrcp.f32 %v1735_v17  ;;  %v1596_v4 = vunpack.c.l.bf16 %v1564_v23  ;;  %v802_v13 = vpop.f32.mrf.mxu0  ;;  %v4161_v53 = vmul.f32 %v3099_v28, %v4055_v8 }
 0x1e5   : > { %v891_v43 = vpop.f32.mrf.mxu1  ;;  %3104 = vrcp.f32 %v1736_v48  ;;  %v1438_v12 = vxor.u32 2147516416, %v4148_v44  ;;  %v803_v3 = vadd.f32 %v3316_v16, %v802_v13 }
 0x1e6   : > { %v1628_v31 = vadd.f32 1.0, %v1596_v4 }
 0x1e7   : > { %v1470_v61 = vunpack.c.l.bf16 %v1438_v12  ;;  %v892_v11 = vadd.f32 %v891_v43, %v803_v3  ;;  %v4805_v43 = vmov 0 }
 0x1e8   : > { %v1660_v17 = vpack.c.bf16 %v1628_v31, %v1628_v31  ;;  %v1247_v47 = vpop.f32.mrf.mxu2  ;;  %v4806_v43 = vsel %vm4164_vm15, 4294967295, %v4805_v43 }
 0x1e9   : > { %v3101_v30 = vpop.eup %3100  ;;  %v1512_v48 = vmul.f32 1.442695, %v1470_v61  ;;  %v928_v23 = vmax.f32 %v892_v11, 0.0  ;;  %v1248_v18 = vadd.f32 %v3993_v51, %v1247_v47  ;;  %4807 = vst [vmem:[#allocation52_spill] sm:$0xff] %v4806_v43  ;;  %v962_v47 = vadd.s32 240, %v3797_v15 }
 0x1ea   : > { %v3103_v50 = vpop.eup %3102  ;;  %v1742_v13 = vunpack.c.h.bf16 %v1660_v17  ;;  %v1743_v4 = vunpack.c.l.bf16 %v1660_v17  ;;  %v1565_v12 = vpack.c.bf16 %v3101_v30, %v3101_v30 }
 0x1eb   : > { %v3105_v0 = vpop.eup %3104  ;;  %3106 = vpow2.f32 %v1512_v48  ;;  %v4168_v27 = vpack.c.bf16 %v928_v23, %v927_v49  ;;  %v4170_v28 = vpack.c.bf16 %v1248_v18, %v1248_v18  ;;  %v963_v18 = vadd.s32 248, %v3797_v15 }
 0x1ec   : > { %v1597_v3 = vunpack.c.l.bf16 %v1565_v12  ;;  %v805_v9 = vpop.f32.mrf.mxu0  ;;  %v4173_v61 = vmul.f32 %v3105_v0, %v4055_v8  ;;  %3108 = vrcp.f32 %v1742_v13  ;;  %v996_v13 = vadd.s32 %v3806_v20, %v962_v47 }
 0x1ed   : > { %4808 = vst [vmem:[#allocation53_spill] sm:$0xff] %v4168_v27  ;;  %v894_v31 = vpop.f32.mrf.mxu1  ;;  %v1439_v50 = vxor.u32 2147516416, %v4170_v28  ;;  %2764 = vmatmul.msk.bf16.gmra.mxu2 %vm4164_vm15, %v4168_v27  ;;  %3110 = vrcp.f32 %v1743_v4  ;;  %v806_v12 = vadd.f32 %v3316_v16, %v805_v9  ;;  %v997_v4 = vadd.s32 %v3806_v20, %v963_v18 }
 0x1ee   : > { %v1629_v11 = vadd.f32 1.0, %v1597_v3  ;;  %vm1029_vm0 = vcmp.lt.s32.totalorder %v996_v13, %v3812_v26 }
 0x1ef   : > { %v1471_v17 = vunpack.c.l.bf16 %v1439_v50  ;;  %v895_v9 = vadd.f32 %v894_v31, %v806_v12  ;;  %vm1030_vm7 = vcmp.lt.s32.totalorder %v997_v4, %v3812_v26 }
 0x1f0   : > { %v1661_v30 = vpack.c.bf16 %v1629_v11, %v1629_v11  ;;  %v1250_v49 = vpop.f32.mrf.mxu2  ;;  %vm4192_vm4 = vmpackc.low %vm1030_vm7, %vm1029_vm0  ;;  %vm2204_vm0 = vcmask 523264  }
 0x1f1   : > { %v3107_v48 = vpop.eup %3106  ;;  %v1514_v23 = vmul.f32 1.442695, %v1471_v17  ;;  %v1251_v15 = vadd.f32 %v3993_v51, %v1250_v49  ;;  %v929_v49 = vmax.f32 %v895_v9, 0.0 }
 0x1f2   : > { %v1749_v0 = vunpack.c.h.bf16 %v1661_v30  ;;  %v1750_v40 = vunpack.c.l.bf16 %v1661_v30  ;;  %v1566_v38 = vpack.c.bf16 %v3107_v48, %v3107_v48  ;;  %v3109_v3 = vpop.eup %3108 }
 0x1f3   : > { %3112 = vpow2.f32 %v1514_v23  ;;  %v3111_v2 = vpop.eup %3110  ;;  %v4188_v23 = vpack.c.bf16 %v1251_v15, %v1251_v15 }
 0x1f4   : > { %3114 = vrcp.f32 %v1749_v0  ;;  %v1598_v50 = vunpack.c.l.bf16 %v1566_v38  ;;  %v807_v11 = vpop.f32.mrf.mxu0  ;;  %v1747_v38 = vmul.f32 %v3111_v2, %v4055_v8 }
 0x1f5   : > { %3116 = vrcp.f32 %v1750_v40  ;;  %v808_v17 = vadd.f32 %v3316_v16, %v807_v11  ;;  %v896_v48 = vpop.f32.mrf.mxu1  ;;  %v1440_v2 = vxor.u32 2147516416, %v4188_v23 }
 0x1f6   : > { %v1630_v30 = vadd.f32 1.0, %v1598_v50  ;;  %v4809_v50 = vmov 0 }
 0x1f7   : > { %v897_v43 = vadd.f32 %v896_v48, %v808_v17  ;;  %v4810_v50 = vsel %vm4192_vm4, 4294967295, %v4809_v50 }
 0x1f8   : > { %v1662_v47 = vpack.c.bf16 %v1630_v30, %v1630_v30  ;;  %v1252_v18 = vpop.f32.mrf.mxu2  ;;  %4811 = vst [vmem:[#allocation54_spill] sm:$0xff] %v4810_v50 }
 0x1f9   : > { %v3113_v0 = vpop.eup %3112  ;;  %v930_v3 = vmax.f32 %v897_v43, 0.0  ;;  %v1253_v40 = vadd.f32 %v3993_v51, %v1252_v18  ;;  %v1472_v18 = vunpack.c.l.bf16 %v1440_v2 }
 0x1fa   : > { %v3115_v31 = vpop.eup %3114  ;;  %v1756_v16 = vunpack.c.h.bf16 %v1662_v47  ;;  %v1567_v12 = vpack.c.bf16 %v3113_v0, %v3113_v0  ;;  %v1757_v4 = vunpack.c.l.bf16 %v1662_v47 }
 0x1fb   : > { %v3117_v13 = vpop.eup %3116  ;;  %v4196_v11 = vpack.c.bf16 %v930_v3, %v929_v49  ;;  %v4198_v15 = vpack.c.bf16 %v1253_v40, %v1253_v40  ;;  %v1516_v26 = vmul.f32 1.442695, %v1472_v18 }
 0x1fc   : > { %v1599_v17 = vunpack.c.l.bf16 %v1567_v12  ;;  %v1754_v43 = vmul.f32 %v3117_v13, %v4055_v8  ;;  %3118 = vrcp.f32 %v1756_v16 }
 0x1fd   : > { %4812 = vst [vmem:[#allocation55_spill] sm:$0xff] %v4196_v11  ;;  %v1441_v9 = vxor.u32 2147516416, %v4198_v15  ;;  %2767 = vmatmul.msk.bf16.gmra.mxu2 %vm4192_vm4, %v4196_v11  ;;  %3120 = vrcp.f32 %v1757_v4 }
 0x1fe   : > { %v1631_v30 = vadd.f32 1.0, %v1599_v17  ;;  %v2985_v12 = vpack.i.bf16 %v1754_v43, %v1747_v38 }
 0x1ff   : > { %v1473_v48 = vunpack.c.l.bf16 %v1441_v9 }
 0x200   : > { %v1663_v47 = vpack.c.bf16 %v1631_v30, %v1631_v30  ;;  %v1255_v0 = vpop.f32.mrf.mxu2  ;;  %2986 = vrot.lane.b32.xlu2 %v2985_v12, %s3545_s30 }
 0x201   : > { %v1518_v49 = vmul.f32 1.442695, %v1473_v48  ;;  %v1256_v3 = vadd.f32 %v3993_v51, %v1255_v0 }
 0x202   : > { %v1763_v40 = vunpack.c.h.bf16 %v1663_v47  ;;  %v1764_v31 = vunpack.c.l.bf16 %v1663_v47  ;;  %v3119_v56 = vpop.eup %3118 }
 0x203   : > { %3122 = vpow2.f32 %v1518_v49  ;;  %v4207_v13 = vpack.c.bf16 %v1256_v3, %v1256_v3  ;;  %v3121_v16 = vpop.eup %3120 }
 0x204   : > { %3124 = vrcp.f32 %v1763_v40  ;;  %v1761_v9 = vmul.f32 %v3121_v16, %v4055_v8 }
 0x205   : > { %3126 = vrcp.f32 %v1764_v31  ;;  %v1442_v4 = vxor.u32 2147516416, %v4207_v13 }
 0x206   : > { %3128 = vpow2.f32 %v1516_v26 }
 0x207   : > { %v1474_v17 = vunpack.c.l.bf16 %v1442_v4 }
 0x208   : > { %v1257_v2 = vpop.f32.mrf.mxu2 }
 0x209   : > { %v3123_v30 = vpop.eup %3122  ;;  %v1520_v38 = vmul.f32 1.442695, %v1474_v17  ;;  %v1258_v43 = vadd.f32 %v3993_v51, %v1257_v2 }
 0x20a   : > { %v3125_v48 = vpop.eup %3124  ;;  %v1569_v0 = vpack.c.bf16 %v3123_v30, %v3123_v30 }
 0x20b   : > { %v3127_v56 = vpop.eup %3126  ;;  %3130 = vpow2.f32 %v1520_v38  ;;  %v4213_v47 = vpack.c.bf16 %v1258_v43, %v1258_v43 }
 0x20c   : > { %v1768_v18 = vmul.f32 %v3127_v56, %v4055_v8  ;;  %v3129_v3 = vpop.eup %3128  ;;  %v1601_v16 = vunpack.c.l.bf16 %v1569_v0 }
 0x20d   : > { %v1443_v49 = vxor.u32 2147516416, %v4213_v47  ;;  %v1568_v12 = vpack.c.bf16 %v3129_v3, %v3129_v3 }
 0x20e   : > { %v2980_v48 = vpack.i.bf16 %v1768_v18, %v1761_v9  ;;  %v1633_v56 = vadd.f32 1.0, %v1601_v16 }
 0x20f   : > { %v1475_v40 = vunpack.c.l.bf16 %v1443_v49  ;;  %v1600_v30 = vunpack.c.l.bf16 %v1568_v12 }
 0x210   : > { %v1260_v26 = vpop.f32.mrf.mxu2  ;;  %2981 = vrot.lane.b32.xlu1 %v2980_v48, %s3545_s30  ;;  %v1665_v11 = vpack.c.bf16 %v1633_v56, %v1633_v56 }
 0x211   : > { %v3131_v31 = vpop.eup %3130  ;;  %v1522_v4 = vmul.f32 1.442695, %v1475_v40  ;;  %v1261_v17 = vadd.f32 %v3993_v51, %v1260_v26  ;;  %v1632_v40 = vadd.f32 1.0, %v1600_v30 }
 0x212   : > { %v1570_v2 = vpack.c.bf16 %v3131_v31, %v3131_v31 }
 0x213   : > { %3132 = vpow2.f32 %v1522_v4  ;;  %v4218_v38 = vpack.c.bf16 %v1261_v17, %v1261_v17  ;;  %v1664_v16 = vpack.c.bf16 %v1632_v40, %v1632_v40 }
 0x214   : > { %v1602_v43 = vunpack.c.l.bf16 %v1570_v2  ;;  %v1777_v2 = vunpack.c.h.bf16 %v1665_v11 }
 0x215   : > { %v1444_v20 = vxor.u32 2147516416, %v4218_v38 }
 0x216   : > { %v1634_v49 = vadd.f32 1.0, %v1602_v43 }
 0x217   : > { %v1476_v27 = vunpack.c.l.bf16 %v1444_v20  ;;  %v1778_v20 = vunpack.c.l.bf16 %v1665_v11 }
 0x218   : > { %v1666_v50 = vpack.c.bf16 %v1634_v49, %v1634_v49  ;;  %v1262_v3 = vpop.f32.mrf.mxu2 }
 0x219   : > { %v3133_v0 = vpop.eup %3132  ;;  %v1524_v26 = vmul.f32 1.442695, %v1476_v27  ;;  %v1263_v9 = vadd.f32 %v3993_v51, %v1262_v3  ;;  %v1770_v3 = vunpack.c.h.bf16 %v1664_v16 }
 0x21a   : > { %v1784_v18 = vunpack.c.h.bf16 %v1666_v50  ;;  %v1571_v31 = vpack.c.bf16 %v3133_v0, %v3133_v0  ;;  %v1785_v4 = vunpack.c.l.bf16 %v1666_v50 }
 0x21b   : > { %3134 = vpow2.f32 %v1524_v26  ;;  %v4223_v17 = vpack.c.bf16 %v1263_v9, %v1263_v9 }
 0x21c   : > { %v1603_v12 = vunpack.c.l.bf16 %v1571_v31  ;;  %3136 = vrcp.f32 %v1784_v18  ;;  %v1771_v31 = vunpack.c.l.bf16 %v1664_v16 }
 0x21d   : > { %v1445_v48 = vxor.u32 2147516416, %v4223_v17  ;;  %3138 = vrcp.f32 %v1785_v4 }
 0x21e   : > { %v1635_v43 = vadd.f32 1.0, %v1603_v12  ;;  %3140 = vrcp.f32 %v1777_v2 }
 0x21f   : > { %v1477_v30 = vunpack.c.l.bf16 %v1445_v48  ;;  %3142 = vrcp.f32 %v1778_v20 }
 0x220   : > { %v1667_v56 = vpack.c.bf16 %v1635_v43, %v1635_v43  ;;  %v1265_v27 = vpop.f32.mrf.mxu2 }
 0x221   : > { %v3135_v49 = vpop.eup %3134  ;;  %v1526_v0 = vmul.f32 1.442695, %v1477_v30  ;;  %v1266_v50 = vadd.f32 %v3993_v51, %v1265_v27 }
 0x222   : > { %v1791_v26 = vunpack.c.h.bf16 %v1667_v56  ;;  %v1792_v9 = vunpack.c.l.bf16 %v1667_v56  ;;  %v1572_v40 = vpack.c.bf16 %v3135_v49, %v3135_v49  ;;  %v3137_v11 = vpop.eup %3136 }
 0x223   : > { %3144 = vpow2.f32 %v1526_v0  ;;  %v4227_v36 = vpack.c.bf16 %v1266_v50, %v1266_v50  ;;  %v3139_v4 = vpop.eup %3138 }
 0x224   : > { %3146 = vrcp.f32 %v1791_v26  ;;  %v1604_v18 = vunpack.c.l.bf16 %v1572_v40  ;;  %v3141_v48 = vpop.eup %3140  ;;  %v1789_v16 = vmul.f32 %v3139_v4, %v4055_v8 }
 0x225   : > { %3148 = vrcp.f32 %v1792_v9  ;;  %v1446_v12 = vxor.u32 2147516416, %v4227_v36  ;;  %v3143_v20 = vpop.eup %3142 }
 0x226   : > { %3150 = vrcp.f32 %v1770_v3  ;;  %v1636_v2 = vadd.f32 1.0, %v1604_v18  ;;  %v1782_v4 = vmul.f32 %v3143_v20, %v4055_v8 }
 0x227   : > { %3152 = vrcp.f32 %v1771_v31  ;;  %v1478_v43 = vunpack.c.l.bf16 %v1446_v12 }
 0x228   : > { %v1668_v30 = vpack.c.bf16 %v1636_v2, %v1636_v2  ;;  %v1267_v56 = vpop.f32.mrf.mxu2 }
 0x229   : > { %v3145_v27 = vpop.eup %3144  ;;  %v1528_v49 = vmul.f32 1.442695, %v1478_v43  ;;  %v1268_v0 = vadd.f32 %v3993_v51, %v1267_v56 }
 0x22a   : > { %v3147_v50 = vpop.eup %3146  ;;  %v1798_v26 = vunpack.c.h.bf16 %v1668_v30  ;;  %v1573_v40 = vpack.c.bf16 %v3145_v27, %v3145_v27  ;;  %v1799_v11 = vunpack.c.l.bf16 %v1668_v30 }
 0x22b   : > { %v3149_v9 = vpop.eup %3148  ;;  %3154 = vpow2.f32 %v1528_v49  ;;  %v4232_v3 = vpack.c.bf16 %v1268_v0, %v1268_v0  ;;  %v4241_v50 = vld [vmem:[%s4672_s5] ss:$0 sm:$0xff] }
 0x22c   : > { %v3151_v18 = vpop.eup %3150  ;;  %v1605_v31 = vunpack.c.l.bf16 %v1573_v40  ;;  %v1796_v12 = vmul.f32 %v3149_v9, %v4055_v8  ;;  %3156 = vrcp.f32 %v1798_v26 }
 0x22d   : > { %v3153_v2 = vpop.eup %3152  ;;  %v1447_v48 = vxor.u32 2147516416, %v4232_v3  ;;  %3158 = vrcp.f32 %v1799_v11 }
 0x22e   : > { %v1637_v43 = vadd.f32 1.0, %v1605_v31  ;;  %v1775_v30 = vmul.f32 %v3153_v2, %v4055_v8  ;;  %v2970_v26 = vpack.i.bf16 %v1796_v12, %v1789_v16 }
 0x22f   : > { %v1479_v51 = vunpack.c.l.bf16 %v1447_v48 }
 0x230   : > { %v1669_v56 = vpack.c.bf16 %v1637_v43, %v1637_v43  ;;  %v1270_v27 = vpop.f32.mrf.mxu2  ;;  %2971 = vrot.lane.b32.xlu0 %v2970_v26, %s3545_s30 }
 0x231   : > { %v3155_v49 = vpop.eup %3154  ;;  %v1530_v0 = vmul.f32 1.442695, %v1479_v51  ;;  %v1271_v40 = vadd.f32 %v4241_v50, %v1270_v27 }
 0x232   : > { %v1805_v9 = vunpack.c.h.bf16 %v1669_v56  ;;  %v1806_v18 = vunpack.c.l.bf16 %v1669_v56  ;;  %v1574_v20 = vpack.c.bf16 %v3155_v49, %v3155_v49  ;;  %v3157_v31 = vpop.eup %3156 }
 0x233   : > { %3160 = vpow2.f32 %v1530_v0  ;;  %v4244_v11 = vpack.c.bf16 %v1271_v40, %v1271_v40  ;;  %v3159_v2 = vpop.eup %3158 }
 0x234   : > { %3162 = vrcp.f32 %v1805_v9  ;;  %v1606_v48 = vunpack.c.l.bf16 %v1574_v20  ;;  %v4249_v56 = vmul.f32 %v3159_v2, %v4055_v8  ;;  %v2975_v20 = vpack.i.bf16 %v1782_v4, %v1775_v30 }
 0x235   : > { %4813 = vst [vmem:[#allocation56_spill] sm:$0xff] %v4244_v11  ;;  %3164 = vrcp.f32 %v1806_v18  ;;  %v1448_v43 = vxor.u32 2147516416, %v4244_v11 }
 0x236   : > { %v1638_v51 = vadd.f32 1.0, %v1606_v48 }
 0x237   : > { %v1480_v37 = vunpack.c.l.bf16 %v1448_v43 }
 0x238   : > { %v1670_v58 = vpack.c.bf16 %v1638_v51, %v1638_v51  ;;  %v1272_v27 = vpop.f32.mrf.mxu2  ;;  %2976 = vrot.lane.b32.xlu0 %v2975_v20, %s3545_s30 }
 0x239   : > { %v3161_v16 = vpop.eup %3160  ;;  %v1532_v12 = vmul.f32 1.442695, %v1480_v37  ;;  %v1273_v49 = vadd.f32 %v4241_v50, %v1272_v27 }
 0x23a   : > { %v3163_v0 = vpop.eup %3162  ;;  %v1812_v40 = vunpack.c.h.bf16 %v1670_v58  ;;  %v1575_v9 = vpack.c.bf16 %v3161_v16, %v3161_v16  ;;  %v1813_v31 = vunpack.c.l.bf16 %v1670_v58 }
 0x23b   : > { %v3165_v26 = vpop.eup %3164  ;;  %3166 = vpow2.f32 %v1532_v12  ;;  %v4252_v18 = vpack.c.bf16 %v1273_v49, %v1273_v49 }
 0x23c   : > { %v1607_v48 = vunpack.c.l.bf16 %v1575_v9  ;;  %v4256_v43 = vmul.f32 %v3165_v26, %v4055_v8  ;;  %3168 = vrcp.f32 %v1812_v40 }
 0x23d   : > { %4814 = vst [vmem:[#allocation57_spill] sm:$0xff] %v4252_v18  ;;  %v1449_v2 = vxor.u32 2147516416, %v4252_v18  ;;  %3170 = vrcp.f32 %v1813_v31  ;;  %v4815_v31 = vpack.i.bf16 %v4173_v61, %v4161_v53 }
 0x23e   : > { %v1639_v37 = vadd.f32 1.0, %v1607_v48 }
 0x23f   : > { %v1481_v51 = vunpack.c.l.bf16 %v1449_v2 }
 0x240   : > { %v1671_v27 = vpack.c.bf16 %v1639_v37, %v1639_v37  ;;  %v1275_v16 = vpop.f32.mrf.mxu2  ;;  %2996 = vrot.lane.b32.xlu0 %v4815_v31, %s3545_s30 }
 0x241   : > { %v3167_v4 = vpop.eup %3166  ;;  %v1534_v30 = vmul.f32 1.442695, %v1481_v51  ;;  %v1276_v58 = vadd.f32 %v4241_v50, %v1275_v16 }
 0x242   : > { %v1819_v12 = vunpack.c.h.bf16 %v1671_v27  ;;  %v1820_v49 = vunpack.c.l.bf16 %v1671_v27  ;;  %v1576_v0 = vpack.c.bf16 %v3167_v4, %v3167_v4  ;;  %v3169_v26 = vpop.eup %3168 }
 0x243   : > { %3172 = vpow2.f32 %v1534_v30  ;;  %v4262_v20 = vpack.c.bf16 %v1276_v58, %v1276_v58  ;;  %v3171_v48 = vpop.eup %3170 }
 0x244   : > { %3174 = vrcp.f32 %v1819_v12  ;;  %v1608_v40 = vunpack.c.l.bf16 %v1576_v0  ;;  %v4270_v4 = vmul.f32 %v3171_v48, %v4055_v8  ;;  %v1341_v48 = vunpack.c.l.bf16 %v4135_v60 }
 0x245   : > { %3176 = vrcp.f32 %v1820_v49  ;;  %v1450_v2 = vxor.u32 2147516416, %v4262_v20 }
 0x246   : > { %v1640_v37 = vadd.f32 1.0, %v1608_v40  ;;  %v1340_v40 = vunpack.c.l.bf16 %v4115_v33 }
 0x247   : > { %v1482_v51 = vunpack.c.l.bf16 %v1450_v2 }
 0x248   : > { %v1672_v27 = vpack.c.bf16 %v1640_v37, %v1640_v37  ;;  %v1277_v16 = vpop.f32.mrf.mxu2 }
 0x249   : > { %v3173_v30 = vpop.eup %3172  ;;  %v1536_v58 = vmul.f32 1.442695, %v1482_v51  ;;  %v1278_v12 = vadd.f32 %v4241_v50, %v1277_v16 }
 0x24a   : > { %v3175_v0 = vpop.eup %3174  ;;  %v1826_v26 = vunpack.c.h.bf16 %v1672_v27  ;;  %v1577_v9 = vpack.c.bf16 %v3173_v30, %v3173_v30  ;;  %v1827_v61 = vunpack.c.l.bf16 %v1672_v27 }
 0x24b   : > { %v3177_v53 = vpop.eup %3176  ;;  %3178 = vpow2.f32 %v1536_v58  ;;  %v4273_v49 = vpack.c.bf16 %v1278_v12, %v1278_v12 }
 0x24c   : > { %v1609_v31 = vunpack.c.l.bf16 %v1577_v9  ;;  %v4277_v2 = vmul.f32 %v3177_v53, %v4055_v8  ;;  %3180 = vrcp.f32 %v1826_v26 }
 0x24d   : > { %v1451_v37 = vxor.u32 2147516416, %v4273_v49  ;;  %3182 = vrcp.f32 %v1827_v61 }
 0x24e   : > { %v1641_v51 = vadd.f32 1.0, %v1609_v31  ;;  %3184 = vtanh.f32 %v1340_v40 }
 0x24f   : > { %v1483_v16 = vunpack.c.l.bf16 %v1451_v37  ;;  %3186 = vtanh.f32 %v1341_v48 }
 0x250   : > { %v1673_v30 = vpack.c.bf16 %v1641_v51, %v1641_v51  ;;  %v1280_v27 = vpop.f32.mrf.mxu2 }
 0x251   : > { %v3179_v58 = vpop.eup %3178  ;;  %v1538_v12 = vmul.f32 1.442695, %v1483_v16  ;;  %v1281_v33 = vadd.f32 %v4241_v50, %v1280_v27 }
 0x252   : > { %v1833_v9 = vunpack.c.h.bf16 %v1673_v30  ;;  %v1834_v0 = vunpack.c.l.bf16 %v1673_v30  ;;  %v1578_v53 = vpack.c.bf16 %v3179_v58, %v3179_v58  ;;  %v3181_v26 = vpop.eup %3180 }
 0x253   : > { %3188 = vpow2.f32 %v1538_v12  ;;  %v4284_v59 = vpack.c.bf16 %v1281_v33, %v1281_v33  ;;  %v3183_v40 = vpop.eup %3182 }
 0x254   : > { %3190 = vrcp.f32 %v1833_v9  ;;  %v1610_v61 = vunpack.c.l.bf16 %v1578_v53  ;;  %v3185_v48 = vpop.eup %3184  ;;  %v4288_v58 = vmul.f32 %v3183_v40, %v4055_v8 }
 0x255   : > { %3192 = vrcp.f32 %v1834_v0  ;;  %v1452_v31 = vxor.u32 2147516416, %v4284_v59  ;;  %v3187_v51 = vpop.eup %3186  ;;  %v1404_v12 = vpack.c.bf16 %v3185_v48, %v3185_v48 }
 0x256   : > { %v1642_v37 = vadd.f32 1.0, %v1610_v61  ;;  %v1405_v53 = vpack.c.bf16 %v3187_v51, %v3187_v51 }
 0x257   : > { %v1484_v16 = vunpack.c.l.bf16 %v1452_v31  ;;  %v1918_v46 = vunpack.c.l.bf16 %v1404_v12 }
 0x258   : > { %v1674_v27 = vpack.c.bf16 %v1642_v37, %v1642_v37  ;;  %v1282_v30 = vpop.f32.mrf.mxu2 }
 0x259   : > { %v3189_v60 = vpop.eup %3188  ;;  %v1540_v33 = vmul.f32 1.442695, %v1484_v16  ;;  %v1283_v26 = vadd.f32 %v4241_v50, %v1282_v30  ;;  %v1919_v16 = vunpack.c.l.bf16 %v1405_v53 }
 0x25a   : > { %v3191_v9 = vpop.eup %3190  ;;  %v1840_v19 = vunpack.c.h.bf16 %v1674_v27  ;;  %v1579_v0 = vpack.c.bf16 %v3189_v60, %v3189_v60  ;;  %v1841_v45 = vunpack.c.l.bf16 %v1674_v27  ;;  %v2987_v30 = vpop.permute.xlu2 %2986 }
 0x25b   : > { %v3193_v21 = vpop.eup %3192  ;;  %3194 = vpow2.f32 %v1540_v33  ;;  %v4291_v61 = vpack.c.bf16 %v1283_v26, %v1283_v26  ;;  %v2989_v9 = vunpack.i.h.bf16 %v2987_v30  ;;  %v2988_v60 = vunpack.i.l.bf16 %v2987_v30 }
 0x25c   : > { %v1611_v31 = vunpack.c.l.bf16 %v1579_v0  ;;  %v4294_v37 = vmul.f32 %v3193_v21, %v4055_v8  ;;  %3196 = vrcp.f32 %v1840_v19 }
 0x25d   : > { %v1453_v40 = vxor.u32 2147516416, %v4291_v61  ;;  %3198 = vrcp.f32 %v1841_v45  ;;  %v4297_v6 = vmul.f32 %v2989_v9, %v1919_v16  ;;  %v4299_v0 = vmul.f32 %v2988_v60, %v1918_v46 }
 0x25e   : > { %v1643_v48 = vadd.f32 1.0, %v1611_v31 }
 0x25f   : > { %v1485_v51 = vunpack.c.l.bf16 %v1453_v40 }
 0x260   : > { %v1675_v5 = vpack.c.bf16 %v1643_v48, %v1643_v48  ;;  %v1285_v27 = vpop.f32.mrf.mxu2 }
 0x261   : > { %v3195_v33 = vpop.eup %3194  ;;  %v1542_v26 = vmul.f32 1.442695, %v1485_v51  ;;  %v1286_v21 = vadd.f32 %v4241_v50, %v1285_v27 }
 0x262   : > { %v1847_v34 = vunpack.c.h.bf16 %v1675_v5  ;;  %v1848_v12 = vunpack.c.l.bf16 %v1675_v5  ;;  %v1580_v19 = vpack.c.bf16 %v3195_v33, %v3195_v33  ;;  %v3197_v40 = vpop.eup %3196 }
 0x263   : > { %3200 = vpow2.f32 %v1542_v26  ;;  %v4304_v45 = vpack.c.bf16 %v1286_v21, %v1286_v21  ;;  %v3199_v16 = vpop.eup %3198 }
 0x264   : > { %3202 = vrcp.f32 %v1847_v34  ;;  %v1612_v48 = vunpack.c.l.bf16 %v1580_v19  ;;  %v4310_v60 = vmul.f32 %v3199_v16, %v4055_v8 }
 0x265   : > { %3204 = vrcp.f32 %v1848_v12  ;;  %v1454_v46 = vxor.u32 2147516416, %v4304_v45 }
 0x266   : > { %v1644_v30 = vadd.f32 1.0, %v1612_v48 }
 0x267   : > { %v1486_v51 = vunpack.c.l.bf16 %v1454_v46 }
 0x268   : > { %v1676_v5 = vpack.c.bf16 %v1644_v30, %v1644_v30  ;;  %v1287_v9 = vpop.f32.mrf.mxu2 }
 0x269   : > { %v3201_v27 = vpop.eup %3200  ;;  %v1544_v33 = vmul.f32 1.442695, %v1486_v51  ;;  %v1288_v26 = vadd.f32 %v4241_v50, %v1287_v9 }
 0x26a   : > { %v3203_v21 = vpop.eup %3202  ;;  %v1854_v31 = vunpack.c.h.bf16 %v1676_v5  ;;  %v1581_v40 = vpack.c.bf16 %v3201_v27, %v3201_v27  ;;  %v1855_v19 = vunpack.c.l.bf16 %v1676_v5 }
 0x26b   : > { %v3205_v34 = vpop.eup %3204  ;;  %3206 = vpow2.f32 %v1544_v33  ;;  %v4313_v12 = vpack.c.bf16 %v1288_v26, %v1288_v26 }
 0x26c   : > { %v1613_v53 = vunpack.c.l.bf16 %v1581_v40  ;;  %v4316_v48 = vmul.f32 %v3205_v34, %v4055_v8  ;;  %3208 = vrcp.f32 %v1854_v31 }
 0x26d   : > { %v1455_v46 = vxor.u32 2147516416, %v4313_v12  ;;  %3210 = vrcp.f32 %v1855_v19 }
 0x26e   : > { %v1645_v16 = vadd.f32 1.0, %v1613_v53  ;;  %v1342_v53 = vunpack.c.l.bf16 %v4148_v44 }
 0x26f   : > { %v1487_v30 = vunpack.c.l.bf16 %v1455_v46 }
 0x270   : > { %v1677_v51 = vpack.c.bf16 %v1645_v16, %v1645_v16  ;;  %v1290_v9 = vpop.f32.mrf.mxu2  ;;  %v1343_v16 = vunpack.c.l.bf16 %v4170_v28 }
 0x271   : > { %v3207_v21 = vpop.eup %3206  ;;  %v1546_v35 = vmul.f32 1.442695, %v1487_v30  ;;  %v1291_v27 = vadd.f32 %v4241_v50, %v1290_v9 }
 0x272   : > { %v1861_v5 = vunpack.c.h.bf16 %v1677_v51  ;;  %v1862_v33 = vunpack.c.l.bf16 %v1677_v51  ;;  %v1582_v26 = vpack.c.bf16 %v3207_v21, %v3207_v21  ;;  %v3209_v62 = vpop.eup %3208 }
 0x273   : > { %3212 = vpow2.f32 %v1546_v35  ;;  %v4322_v34 = vpack.c.bf16 %v1291_v27, %v1291_v27  ;;  %v3211_v19 = vpop.eup %3210 }
 0x274   : > { %3214 = vrcp.f32 %v1861_v5  ;;  %v1614_v31 = vunpack.c.l.bf16 %v1582_v26  ;;  %v1859_v35 = vmul.f32 %v3211_v19, %v4055_v8 }
 0x275   : > { %3216 = vrcp.f32 %v1862_v33  ;;  %v1456_v46 = vxor.u32 2147516416, %v4322_v34 }
 0x276   : > { %v1646_v30 = vadd.f32 1.0, %v1614_v31  ;;  %3218 = vtanh.f32 %v1342_v53 }
 0x277   : > { %v1488_v51 = vunpack.c.l.bf16 %v1456_v46  ;;  %3220 = vtanh.f32 %v1343_v16 }
 0x278   : > { %v1678_v9 = vpack.c.bf16 %v1646_v30, %v1646_v30  ;;  %v1292_v21 = vpop.f32.mrf.mxu2 }
 0x279   : > { %v3213_v27 = vpop.eup %3212  ;;  %v1548_v40 = vmul.f32 1.442695, %v1488_v51  ;;  %v1293_v62 = vadd.f32 %v4241_v50, %v1292_v21 }
 0x27a   : > { %v3215_v44 = vpop.eup %3214  ;;  %v1868_v5 = vunpack.c.h.bf16 %v1678_v9  ;;  %v1583_v26 = vpack.c.bf16 %v3213_v27, %v3213_v27  ;;  %v1869_v63 = vunpack.c.l.bf16 %v1678_v9 }
 0x27b   : > { %v3217_v33 = vpop.eup %3216  ;;  %3222 = vpow2.f32 %v1548_v40  ;;  %v4329_v24 = vpack.c.bf16 %v1293_v62, %v1293_v62 }
 0x27c   : > { %v1615_v28 = vunpack.c.l.bf16 %v1583_v26  ;;  %v1866_v53 = vmul.f32 %v3217_v33, %v4055_v8  ;;  %v3219_v46 = vpop.eup %3218  ;;  %3224 = vrcp.f32 %v1868_v5 }
 0x27d   : > { %v1457_v31 = vxor.u32 2147516416, %v4329_v24  ;;  %3226 = vrcp.f32 %v1869_v63  ;;  %v3221_v51 = vpop.eup %3220  ;;  %v1406_v27 = vpack.c.bf16 %v3219_v46, %v3219_v46 }
 0x27e   : > { %v1647_v19 = vadd.f32 1.0, %v1615_v28  ;;  %v3010_v18 = vpack.i.bf16 %v1866_v53, %v1859_v35  ;;  %v1407_v33 = vpack.c.bf16 %v3221_v51, %v3221_v51 }
 0x27f   : > { %v1489_v30 = vunpack.c.l.bf16 %v1457_v31 }
 0x280   : > { %v1679_v21 = vpack.c.bf16 %v1647_v19, %v1647_v19  ;;  %v1295_v16 = vpop.f32.mrf.mxu2  ;;  %3011 = vrot.lane.b32.xlu0 %v3010_v18, %s3545_s30 }
 0x281   : > { %v3223_v44 = vpop.eup %3222  ;;  %v1550_v25 = vmul.f32 1.442695, %v1489_v30  ;;  %v1296_v40 = vadd.f32 %v4241_v50, %v1295_v16  ;;  %v1920_v30 = vunpack.c.l.bf16 %v1406_v27 }
 0x282   : > { %v1875_v9 = vunpack.c.h.bf16 %v1679_v21  ;;  %v1876_v62 = vunpack.c.l.bf16 %v1679_v21  ;;  %v1584_v26 = vpack.c.bf16 %v3223_v44, %v3223_v44  ;;  %v3225_v5 = vpop.eup %3224  ;;  %v2982_v19 = vpop.permute.xlu1 %2981  ;;  %v1921_v21 = vunpack.c.l.bf16 %v1407_v33 }
 0x283   : > { %3228 = vpow2.f32 %v1550_v25  ;;  %v4334_v11 = vpack.c.bf16 %v1296_v40, %v1296_v40  ;;  %v3227_v28 = vpop.eup %3226  ;;  %v2984_v44 = vunpack.i.h.bf16 %v2982_v19  ;;  %v2983_v35 = vunpack.i.l.bf16 %v2982_v19 }
 0x284   : > { %3230 = vrcp.f32 %v1875_v9  ;;  %v1616_v63 = vunpack.c.l.bf16 %v1584_v26  ;;  %v1873_v51 = vmul.f32 %v3227_v28, %v4055_v8  ;;  %v4817_v19 = vpack.i.bf16 %v4076_v1, %v4061_v39 }
 0x285   : > { %4816 = vst [vmem:[#allocation58_spill] sm:$0xff] %v4334_v11  ;;  %3232 = vrcp.f32 %v1876_v62  ;;  %v1458_v31 = vxor.u32 2147516416, %v4334_v11  ;;  %v4339_v26 = vmul.f32 %v2984_v44, %v1921_v21  ;;  %v4341_v18 = vmul.f32 %v2983_v35, %v1920_v30 }
 0x286   : > { %v1648_v46 = vadd.f32 1.0, %v1616_v63  ;;  %v4818_v1 = vpack.i.bf16 %v4256_v43, %v4249_v56  ;;  %v1344_v43 = vunpack.c.l.bf16 %v4188_v23  ;;  %v4820_v23 = vpack.i.bf16 %v4294_v37, %v4288_v58 }
 0x287   : > { %v1490_v16 = vunpack.c.l.bf16 %v1458_v31 }
 0x288   : > { %v1680_v53 = vpack.c.bf16 %v1648_v46, %v1648_v46  ;;  %v1297_v25 = vpop.f32.mrf.mxu2  ;;  %v2139_v46 = vpack.c.bf16 %v4339_v26, %v4341_v18  ;;  %3026 = vrot.lane.b32.xlu0 %v4817_v19, %s3545_s30  ;;  %v1332_v26 = vunpack.c.l.bf16 %v3999_v57  ;;  %v1361_v18 = vunpack.c.l.bf16 %v4329_v24 }
 0x289   : > { %v3229_v40 = vpop.eup %3228  ;;  %v1552_v9 = vmul.f32 1.442695, %v1490_v16  ;;  %v1298_v62 = vadd.f32 %v4241_v50, %v1297_v25  ;;  %v1359_v24 = vunpack.c.l.bf16 %v4313_v12 }
 0x28a   : > { %v3231_v5 = vpop.eup %3230  ;;  %v1882_v63 = vunpack.c.h.bf16 %v1680_v53  ;;  %v1883_v11 = vunpack.c.l.bf16 %v1680_v53  ;;  %v1585_v27 = vpack.c.bf16 %v3229_v40, %v3229_v40 }
 0x28b   : > { %v3233_v31 = vpop.eup %3232  ;;  %3234 = vpow2.f32 %v1552_v9  ;;  %v4344_v33 = vpack.c.bf16 %v1298_v62, %v1298_v62 }
 0x28c   : > { %v1617_v28 = vunpack.c.l.bf16 %v1585_v27  ;;  %v1880_v30 = vmul.f32 %v3233_v31, %v4055_v8  ;;  %3236 = vrcp.f32 %v1882_v63  ;;  %v1346_v63 = vunpack.c.l.bf16 %v4207_v13 }
 0x28d   : > { %v1459_v50 = vxor.u32 2147516416, %v4344_v33  ;;  %3238 = vrcp.f32 %v1883_v11  ;;  %v1347_v27 = vunpack.c.l.bf16 %v4213_v47  ;;  %v4819_v13 = vpack.i.bf16 %v4109_v7, %v4094_v29 }
 0x28e   : > { %v1649_v16 = vadd.f32 1.0, %v1617_v28  ;;  %v3000_v62 = vpack.i.bf16 %v1880_v30, %v1873_v51 }
 0x28f   : > { %v1491_v21 = vunpack.c.l.bf16 %v1459_v50 }
 0x290   : > { %v1681_v44 = vpack.c.bf16 %v1649_v16, %v1649_v16  ;;  %3001 = vrot.lane.b32.xlu1 %v3000_v62, %s3545_s30  ;;  %3041 = vrot.lane.b32.xlu0 %v4818_v1, %s3545_s30 }
 0x291   : > { %v3235_v35 = vpop.eup %3234  ;;  %v1554_v53 = vmul.f32 1.442695, %v1491_v21 }
 0x292   : > { %v1889_v25 = vunpack.c.h.bf16 %v1681_v44  ;;  %v1890_v40 = vunpack.c.l.bf16 %v1681_v44  ;;  %v1586_v9 = vpack.c.bf16 %v3235_v35, %v3235_v35  ;;  %v3237_v5 = vpop.eup %3236  ;;  %v1345_v35 = vunpack.c.l.bf16 %v4198_v15 }
 0x293   : > { %3240 = vpow2.f32 %v1554_v53  ;;  %v3239_v11 = vpop.eup %3238 }
 0x294   : > { %3242 = vrcp.f32 %v1889_v25  ;;  %v1618_v39 = vunpack.c.l.bf16 %v1586_v9  ;;  %v1887_v51 = vmul.f32 %v3239_v11, %v4055_v8  ;;  %v1338_v11 = vunpack.c.l.bf16 %v4082_v32 }
 0x295   : > { %3244 = vrcp.f32 %v1890_v40 }
 0x296   : > { %v1650_v31 = vadd.f32 1.0, %v1618_v39  ;;  %3246 = vtanh.f32 %v1346_v63  ;;  %v1339_v63 = vunpack.c.l.bf16 %v4102_v41  ;;  %v4821_v41 = vpack.i.bf16 %v4142_v10, %v4127_v55 }
 0x297   : > { %3248 = vtanh.f32 %v1347_v27 }
 0x298   : > { %v1682_v28 = vpack.c.bf16 %v1650_v31, %v1650_v31  ;;  %3016 = vrot.lane.b32.xlu1 %v4819_v13, %s3545_s30 }
 0x299   : > { %v3241_v19 = vpop.eup %3240 }
 0x29a   : > { %v3243_v30 = vpop.eup %3242  ;;  %v1896_v50 = vunpack.c.h.bf16 %v1682_v28  ;;  %v1587_v16 = vpack.c.bf16 %v3241_v19, %v3241_v19  ;;  %v1897_v44 = vunpack.c.l.bf16 %v1682_v28 }
 0x29b   : > { %v3245_v21 = vpop.eup %3244 }
 0x29c   : > { %v1619_v56 = vunpack.c.l.bf16 %v1587_v16  ;;  %v1894_v47 = vmul.f32 %v3245_v21, %v4055_v8  ;;  %3250 = vrcp.f32 %v1896_v50  ;;  %v3247_v25 = vpop.eup %3246 }
 0x29d   : > { %3252 = vrcp.f32 %v1897_v44  ;;  %v3249_v40 = vpop.eup %3248  ;;  %v1410_v1 = vpack.c.bf16 %v3247_v25, %v3247_v25 }
 0x29e   : > { %v1651_v53 = vadd.f32 1.0, %v1619_v56  ;;  %3254 = vtanh.f32 %v1344_v43  ;;  %v2990_v39 = vpack.i.bf16 %v1894_v47, %v1887_v51  ;;  %v1411_v29 = vpack.c.bf16 %v3249_v40, %v3249_v40 }
 0x29f   : > { %3256 = vtanh.f32 %v1345_v35  ;;  %v1924_v19 = vunpack.c.l.bf16 %v1410_v1 }
 0x2a0   : > { %v1683_v9 = vpack.c.bf16 %v1651_v53, %v1651_v53  ;;  %2991 = vrot.lane.b32.xlu2 %v2990_v39, %s3545_s30  ;;  %3031 = vrot.lane.b32.xlu1 %v4820_v23, %s3545_s30  ;;  %v1925_v30 = vunpack.c.l.bf16 %v1411_v29 }
 0x2a2   : > { %v1903_v62 = vunpack.c.h.bf16 %v1683_v9  ;;  %v1904_v5 = vunpack.c.l.bf16 %v1683_v9  ;;  %v3251_v7 = vpop.eup %3250  ;;  %v2972_v27 = vpop.permute.xlu0 %2971 }
 0x2a3   : > { %v3253_v15 = vpop.eup %3252  ;;  %v2974_v28 = vunpack.i.h.bf16 %v2972_v27  ;;  %v2973_v51 = vunpack.i.l.bf16 %v2972_v27 }
 0x2a4   : > { %3258 = vrcp.f32 %v1903_v62  ;;  %v3255_v31 = vpop.eup %3254  ;;  %v1901_v16 = vmul.f32 %v3253_v15, %v4055_v8 }
 0x2a5   : > { %3260 = vrcp.f32 %v1904_v5  ;;  %v3257_v50 = vpop.eup %3256  ;;  %v2116_v21 = vmul.f32 %v2973_v51, %v1924_v19  ;;  %v2117_v44 = vmul.f32 %v2974_v28, %v1925_v30  ;;  %v1408_v56 = vpack.c.bf16 %v3255_v31, %v3255_v31 }
 0x2a6   : > { %3262 = vtanh.f32 %v1338_v11  ;;  %v1409_v32 = vpack.c.bf16 %v3257_v50, %v3257_v50  ;;  %v4823_v30 = vpack.i.bf16 %v4277_v2, %v4270_v4  ;;  %v2874_v4 = vld [vmem:[%s4673_s6] sm:$0xff]  ;;  %v1357_v2 = vunpack.c.l.bf16 %v4291_v61 }
 0x2a7   : > { %3264 = vtanh.f32 %v1339_v63  ;;  %v2141_v13 = vpack.c.bf16 %v2117_v44, %v2116_v21  ;;  %v1922_v62 = vunpack.c.l.bf16 %v1408_v56  ;;  %v1356_v21 = vunpack.c.l.bf16 %v4284_v59 }
 0x2a8   : > { %3006 = vrot.lane.b32.xlu2 %v4821_v41, %s3545_s30  ;;  %v1923_v25 = vunpack.c.l.bf16 %v1409_v32  ;;  %v1336_v44 = vunpack.c.l.bf16 %v4049_v54  ;;  %v1337_v61 = vunpack.c.l.bf16 %v4069_v52  ;;  %v2875_v54 = vld [vmem:[%s4673_s6 + $0x8] sm:$0xff]  ;;  %v1334_v52 = vunpack.c.l.bf16 %v4024_v42 }
 0x2a9   : > { %v2230_v43 = vsel %vm2204_vm0, %v2141_v13, 0  ;;  %3266 = vtanh.f32 %v1356_v21 }
 0x2aa   : > { %v3259_v58 = vpop.eup %3258  ;;  %2256 = vmatpush.bf16.xpose.msra.mxu3 %v2230_v43  ;;  %v2977_v35 = vpop.permute.xlu0 %2976  ;;  %3268 = vtanh.f32 %v1357_v2 }
 0x2ab   : > { %v3261_v37 = vpop.eup %3260  ;;  %v2979_v40 = vunpack.i.h.bf16 %v2977_v35  ;;  %v2978_v9 = vunpack.i.l.bf16 %v2977_v35  ;;  %3270 = vtanh.f32 %v1332_v26  ;;  %v1348_v58 = vunpack.c.l.bf16 %v4218_v38 }
 0x2ac   : > { %v1908_v47 = vmul.f32 %v3261_v37, %v4055_v8  ;;  %v3263_v53 = vpop.eup %3262  ;;  %v4822_v8 = vpack.i.bf16 %v4316_v48, %v4310_v60  ;;  %v2224_v60 = vsel %vm2204_vm0, %v2139_v46, 0  ;;  %v4824_v48 = vpack.c.bf16 %v4297_v6, %v4299_v0 }
 0x2ad   : > { %v3265_v5 = vpop.eup %3264  ;;  %v2115_v39 = vmul.f32 %v2979_v40, %v1923_v25  ;;  %v2114_v1 = vmul.f32 %v2978_v9, %v1922_v62  ;;  %v1402_v7 = vpack.c.bf16 %v3263_v53, %v3263_v53  ;;  %v1333_v6 = vunpack.c.l.bf16 %v4014_v22 }
 0x2ae   : > { %v3045_v29 = vpack.i.bf16 %v1908_v47, %v1901_v16  ;;  %v1403_v55 = vpack.c.bf16 %v3265_v5, %v3265_v5  ;;  %v2221_v50 = vsel %vm2204_vm0, %v4824_v48, 0  ;;  %v1360_v0 = vunpack.c.l.bf16 %v4322_v34 }
 0x2af   : > { %v2140_v23 = vpack.c.bf16 %v2115_v39, %v2114_v1  ;;  %v1916_v31 = vunpack.c.l.bf16 %v1402_v7  ;;  %v3267_v46 = vpop.eup %3266  ;;  %3272 = vtanh.f32 %v1333_v6  ;;  %v1358_v22 = vunpack.c.l.bf16 %v4304_v45  ;;  %v4825_v6 = vld [vmem:[#allocation56_spill] sm:$0xff] }
 0x2b0   : > { %3021 = vrot.lane.b32.xlu2 %v4822_v8, %s3545_s30  ;;  %3046 = vrot.lane.b32.xlu1 %v3045_v29, %s3545_s30  ;;  %v1917_v11 = vunpack.c.l.bf16 %v1403_v55  ;;  %v3269_v59 = vpop.eup %3268  ;;  %3274 = vtanh.f32 %v1360_v0  ;;  %v1420_v57 = vpack.c.bf16 %v3267_v46, %v3267_v46  ;;  %v1349_v38 = vunpack.c.l.bf16 %v4223_v17 }
 0x2b1   : > { %v2227_v10 = vsel %vm2204_vm0, %v2140_v23, 0  ;;  %3276 = vtanh.f32 %v1361_v18  ;;  %v1421_v37 = vpack.c.bf16 %v3269_v59, %v3269_v59  ;;  %v3271_v56 = vpop.eup %3270  ;;  %v1335_v25 = vunpack.c.l.bf16 %v4039_v14 }
 0x2b2   : > { %2257 = vmatpush.bf16.xpose.msra.mxu3 %v2227_v10  ;;  %v2997_v15 = vpop.permute.xlu0 %2996  ;;  %3278 = vtanh.f32 %v1336_v44  ;;  %v1934_v47 = vunpack.c.l.bf16 %v1420_v57  ;;  %v1396_v53 = vpack.c.bf16 %v3271_v56, %v3271_v56  ;;  %v1354_v17 = vunpack.c.l.bf16 %v4262_v20 }
 0x2b3   : > { %v2999_v63 = vunpack.i.h.bf16 %v2997_v15  ;;  %v2998_v27 = vunpack.i.l.bf16 %v2997_v15  ;;  %3280 = vtanh.f32 %v1337_v61  ;;  %v1935_v43 = vunpack.c.l.bf16 %v1421_v37 }
 0x2b4   : > { %3282 = vtanh.f32 %v1348_v58  ;;  %v1355_v29 = vunpack.c.l.bf16 %v4273_v49  ;;  %v1910_v23 = vunpack.c.l.bf16 %v1396_v53  ;;  %v1351_v49 = vunpack.c.l.bf16 %v4232_v3  ;;  %v4826_v58 = vld [vmem:[#allocation57_spill] sm:$0xff] }
 0x2b5   : > { %v2109_v28 = vmul.f32 %v2999_v63, %v1917_v11  ;;  %v2108_v51 = vmul.f32 %v2998_v27, %v1916_v31  ;;  %v3273_v34 = vpop.eup %3272  ;;  %3284 = vtanh.f32 %v1358_v22  ;;  %v1352_v0 = vunpack.c.l.bf16 %v4825_v6  ;;  %v2876_v22 = vld [vmem:[%s4673_s6 + $0x10] sm:$0xff] }
 0x2b6   : > { %v3275_v32 = vpop.eup %3274  ;;  %3286 = vtanh.f32 %v1359_v24  ;;  %v1397_v42 = vpack.c.bf16 %v3273_v34, %v3273_v34  ;;  %v1353_v57 = vunpack.c.l.bf16 %v4826_v58 }
 0x2b7   : > { %v2137_v19 = vpack.c.bf16 %v2109_v28, %v2108_v51  ;;  %v3277_v41 = vpop.eup %3276  ;;  %3288 = vtanh.f32 %v1334_v52  ;;  %v1424_v62 = vpack.c.bf16 %v3275_v32, %v3275_v32 }
 0x2b8   : > { %3036 = vrot.lane.b32.xlu2 %v4823_v30, %s3545_s30  ;;  %v3279_v9 = vpop.eup %3278  ;;  %v1425_v5 = vpack.c.bf16 %v3277_v41, %v3277_v41  ;;  %3290 = vtanh.f32 %v1349_v38  ;;  %v1911_v7 = vunpack.c.l.bf16 %v1397_v42  ;;  %v1350_v30 = vunpack.c.l.bf16 %v4227_v36  ;;  %s3431_s30 = sshra.s32 %s2400_s28, 4  ;;  %s3432_s30 = int_to_ptr.hbm [resolvable:$true] %s3431_s30 }
 0x2b9   : > { %v2218_v16 = vsel %vm2204_vm0, %v2137_v19, 0  ;;  %v3281_v39 = vpop.eup %3280  ;;  %3292 = vtanh.f32 %v1335_v25  ;;  %v1400_v8 = vpack.c.bf16 %v3279_v9, %v3279_v9  ;;  %v1938_v10 = vunpack.c.l.bf16 %v1424_v62  ;;  %p3438_p4 = scmp.lt.s32.totalorder %s3432_s30, %s4675_s8 }
 0x2ba   : > { %2258 = vmatpush.bf16.xpose.msra.mxu3 %v2224_v60  ;;  %v3283_v14 = vpop.eup %3282  ;;  %3294 = vtanh.f32 %v1354_v17  ;;  %v1939_v15 = vunpack.c.l.bf16 %v1425_v5  ;;  %v1401_v60 = vpack.c.bf16 %v3281_v39, %v3281_v39 }
 0x2bb   : > { %v3285_v55 = vpop.eup %3284  ;;  %3296 = vtanh.f32 %v1355_v29  ;;  %v1412_v26 = vpack.c.bf16 %v3283_v14, %v3283_v14  ;;  %v1914_v56 = vunpack.c.l.bf16 %v1400_v8 }
 0x2bc   : > { %v3287_v63 = vpop.eup %3286  ;;  %v1422_v18 = vpack.c.bf16 %v3285_v55, %v3285_v55  ;;  %3298 = vtanh.f32 %v1350_v30  ;;  %v1915_v37 = vunpack.c.l.bf16 %v1401_v60 }
 0x2bd   : > { %v4430_v19 = vpop.eup %3288  ;;  %v1423_v46 = vpack.c.bf16 %v3287_v63, %v3287_v63  ;;  %3300 = vtanh.f32 %v1351_v49 }
 0x2be   : > { %v3291_v48 = vpop.eup %3290  ;;  %v1398_v44 = vpack.c.bf16 %v4430_v19, %v4430_v19  ;;  %3302 = vtanh.f32 %v1352_v0 }
 0x2bf   : > { %v3293_v2 = vpop.eup %3292  ;;  %v1413_v61 = vpack.c.bf16 %v3291_v48, %v3291_v48  ;;  %v1937_v32 = vunpack.c.l.bf16 %v1423_v46  ;;  %3304 = vtanh.f32 %v1353_v57 }
 0x2c0   : > { %v3295_v59 = vpop.eup %3294  ;;  %v1399_v34 = vpack.c.bf16 %v3293_v2, %v3293_v2  ;;  %v1912_v30 = vunpack.c.l.bf16 %v1398_v44  ;;  %v2877_v44 = vld [vmem:[%s4673_s6 + $0x18] sm:$0xff] }
 0x2c1   : > { %v3297_v24 = vpop.eup %3296  ;;  %v1927_v53 = vunpack.c.l.bf16 %v1413_v61  ;;  %v1418_v14 = vpack.c.bf16 %v3295_v59, %v3295_v59 }
 0x2c2   : > { %2259 = vmatpush.bf16.xpose.msra.mxu3 %v2221_v50  ;;  %v3299_v39 = vpop.eup %3298  ;;  %v1419_v29 = vpack.c.bf16 %v3297_v24, %v3297_v24 }
 0x2c3   : > { %v3301_v55 = vpop.eup %3300 }
 0x2c4   : > { %v1415_v59 = vpack.c.bf16 %v3301_v55, %v3301_v55 }
 0x2ca   : > { %2260 = vmatpush.bf16.xpose.msra.mxu3 %v2218_v16 }
 0x2e5   : > { %2188 = vxpose.xlu1.c.b16.start [1/4] (short) (narrow) %v2874_v4, 16 }
 0x2f2   : > { %v3012_v13 = vpop.permute.xlu0 %3011 }
 0x2f3   : > { %v3014_v35 = vunpack.i.h.bf16 %v3012_v13  ;;  %v3013_v45 = vunpack.i.l.bf16 %v3012_v13  ;;  %v1926_v13 = vunpack.c.l.bf16 %v1412_v26  ;;  %v1414_v26 = vpack.c.bf16 %v3299_v39, %v3299_v39 }
 0x2f5   : > { %v4422_v12 = vmul.f32 %v3014_v35, %v1935_v43  ;;  %v4424_v40 = vmul.f32 %v3013_v45, %v1934_v47  ;;  %2189 = vxpose.xlu1.c.b16.cont [2/4] (short) (narrow) %v2875_v54, 16  ;;  %v1936_v54 = vunpack.c.l.bf16 %v1422_v18  ;;  %v1928_v24 = vunpack.c.l.bf16 %v1414_v26 }
 0x2f7   : > { %v2146_v1 = vpack.c.bf16 %v4422_v12, %v4424_v40  ;;  %v4828_v12 = vld [vmem:[#allocation39_spill] sm:$0xff] }
 0x2fa   : > { %v2992_v11 = vpop.permute.xlu2 %2991  ;;  %v3027_v20 = vpop.permute.xlu0 %3026 }
 0x2fb   : > { %v2994_v27 = vunpack.i.h.bf16 %v2992_v11  ;;  %v2993_v31 = vunpack.i.l.bf16 %v2992_v11  ;;  %v3029_v28 = vunpack.i.h.bf16 %v3027_v20  ;;  %v3028_v51 = vunpack.i.l.bf16 %v3027_v20 }
 0x2fd   : > { %v4434_v50 = vmul.f32 %v2994_v27, %v1939_v15  ;;  %v4436_v16 = vmul.f32 %v2993_v31, %v1938_v10  ;;  %v4438_v21 = vmul.f32 %v3029_v28, %v1911_v7  ;;  %v4440_v4 = vmul.f32 %v3028_v51, %v1910_v23  ;;  %v3303_v15 = vpop.eup %3302 }
 0x2fe   : > { %v3305_v63 = vpop.eup %3304  ;;  %v1932_v27 = vunpack.c.l.bf16 %v1418_v14  ;;  %v1933_v31 = vunpack.c.l.bf16 %v1419_v29  ;;  %v1913_v51 = vunpack.c.l.bf16 %v1399_v34  ;;  %v1416_v61 = vpack.c.bf16 %v3303_v15, %v3303_v15 }
 0x2ff   : > { %v2134_v36 = vpack.c.bf16 %v4438_v21, %v4440_v4  ;;  %v2148_v3 = vpack.c.bf16 %v4434_v50, %v4436_v16  ;;  %v1417_v58 = vpack.c.bf16 %v3305_v63, %v3305_v63 }
 0x301   : > { %v2251_v21 = vsel %vm2204_vm0, %v2148_v3, 0 }
 0x302   : > { %v3002_v52 = vpop.permute.xlu1 %3001  ;;  %v3007_v38 = vpop.permute.xlu2 %3006 }
 0x303   : > { %v3004_v41 = vunpack.i.h.bf16 %v3002_v52  ;;  %v3003_v47 = vunpack.i.l.bf16 %v3002_v52  ;;  %v3009_v43 = vunpack.i.h.bf16 %v3007_v38  ;;  %v3008_v35 = vunpack.i.l.bf16 %v3007_v38  ;;  %v3042_v45 = vpop.permute.xlu0 %3041 }
 0x304   : > { %v3044_v25 = vunpack.i.h.bf16 %v3042_v45  ;;  %v3043_v42 = vunpack.i.l.bf16 %v3042_v45  ;;  %v1930_v38 = vunpack.c.l.bf16 %v1416_v61 }
 0x305   : > { %v4453_v9 = vmul.f32 %v3004_v41, %v1937_v32  ;;  %v4455_v17 = vmul.f32 %v3003_v47, %v1936_v54  ;;  %v2107_v62 = vmul.f32 %v3009_v43, %v1915_v37  ;;  %v2106_v5 = vmul.f32 %v3008_v35, %v1914_v56  ;;  %2190 = vxpose.xlu1.c.b16.cont [3/4] (short) (narrow) %v2876_v22, 16  ;;  %v4827_v56 = vld [vmem:[#allocation58_spill] sm:$0xff] }
 0x306   : > { %v4457_v7 = vmul.f32 %v3044_v25, %v1927_v53  ;;  %v4459_v23 = vmul.f32 %v3043_v42, %v1926_v13  ;;  %v1362_v22 = vunpack.c.l.bf16 %v4827_v56  ;;  %v1363_v54 = vunpack.c.l.bf16 %v4344_v33 }
 0x307   : > { %v2136_v8 = vpack.c.bf16 %v2107_v62, %v2106_v5  ;;  %v2147_v10 = vpack.c.bf16 %v4453_v9, %v4455_v17  ;;  %v1929_v32 = vunpack.c.l.bf16 %v1415_v59  ;;  %v1931_v13 = vunpack.c.l.bf16 %v1417_v58  ;;  %v4842_v59 = vld [vmem:[#allocation25_spill] sm:$0xff]  ;;  %v4844_v58 = vld [vmem:[#allocation55_spill] sm:$0xff] }
 0x308   : > { %v2142_v11 = vpack.c.bf16 %v4457_v7, %v4459_v23  ;;  %3306 = vtanh.f32 %v1362_v22  ;;  %v2209_v33 = vsel %vm2204_vm0, %v2134_v36, 0  ;;  %v2245_v36 = vsel %vm2204_vm0, %v2146_v1, 0  ;;  %v4830_v1 = vld [vmem:[#allocation37_spill] sm:$0xff]  ;;  %v4832_v7 = vld [vmem:[#allocation35_spill] sm:$0xff] }
 0x309   : > { %v2215_v20 = vsel %vm2204_vm0, %v2136_v8, 0  ;;  %3308 = vtanh.f32 %v1363_v54  ;;  %v2248_v4 = vsel %vm2204_vm0, %v2147_v10, 0  ;;  %v2158_v10 = vld [vmem:[%s4674_s7] sm:$0x3]  ;;  %v4848_v22 = vld [vmem:[#allocation51_spill] sm:$0xff] }
 0x30a   : > { %v3022_v28 = vpop.permute.xlu2 %3021  ;;  %2261 = vmatpush.bf16.xpose.msra.mxu3 %v2215_v20  ;;  %v3017_v19 = vpop.permute.xlu1 %3016  ;;  %v2233_v3 = vsel %vm2204_vm0, %v2142_v11, 0  ;;  %v4834_v11 = vld [vmem:[#allocation33_spill] sm:$0xff]  ;;  %v4852_v54 = vld [vmem:[#allocation47_spill] sm:$0xff] }
 0x30b   : > { %v3024_v49 = vunpack.i.h.bf16 %v3022_v28  ;;  %v3023_v60 = vunpack.i.l.bf16 %v3022_v28  ;;  %v3019_v48 = vunpack.i.h.bf16 %v3017_v19  ;;  %v3018_v2 = vunpack.i.l.bf16 %v3017_v19 }
 0x30d   : > { %v2125_v6 = vmul.f32 %v3024_v49, %v1933_v31  ;;  %v2124_v0 = vmul.f32 %v3023_v60, %v1932_v27  ;;  %v2105_v18 = vmul.f32 %v3019_v48, %v1913_v51  ;;  %v2104_v46 = vmul.f32 %v3018_v2, %v1912_v30  ;;  %v4836_v2 = vld [vmem:[#allocation31_spill] sm:$0xff] }
 0x30e   : > { %v3307_v14 = vpop.eup %3306  ;;  %v3546_v60 = vmov 0  }
 0x30f   : > { %v2135_v57 = vpack.c.bf16 %v2105_v18, %v2104_v46  ;;  %v2145_v37 = vpack.c.bf16 %v2125_v6, %v2124_v0  ;;  %v3309_v29 = vpop.eup %3308  ;;  %v1426_v55 = vpack.c.bf16 %v3307_v14, %v3307_v14  ;;  %3050 = vset.pattern.permute.xlu2 %v3546_v60  ;;  %3051 = vset.pattern.permute.xlu0 %v3546_v60  ;;  %v4838_v6 = vld [vmem:[#allocation29_spill] sm:$0xff]  ;;  %v4840_v18 = vld [vmem:[#allocation27_spill] sm:$0xff] }
 0x310   : > { %v1427_v8 = vpack.c.bf16 %v3309_v29, %v3309_v29  ;;  %2161 = vperm.xlu2 %3050, %v2158_v10  }
 0x311   : > { %v2212_v34 = vsel %vm2204_vm0, %v2135_v57, 0  ;;  %v1940_v20 = vunpack.c.l.bf16 %v1426_v55  ;;  %v2242_v49 = vsel %vm2204_vm0, %v2145_v37, 0  ;;  %v4846_v37 = vld [vmem:[#allocation53_spill] sm:$0xff]  ;;  %v4864_v55 = vld [vmem:[#allocation23_spill] sm:$0xff] }
 0x312   : > { %v3037_v52 = vpop.permute.xlu2 %3036  ;;  %v3032_v41 = vpop.permute.xlu1 %3031  ;;  %2262 = vmatpush.bf16.xpose.msra.mxu3 %v2212_v34  ;;  %v1941_v63 = vunpack.c.l.bf16 %v1427_v8  ;;  %v4850_v34 = vld [vmem:[#allocation49_spill] sm:$0xff] }
 0x313   : > { %v3039_v47 = vunpack.i.h.bf16 %v3037_v52  ;;  %v3038_v43 = vunpack.i.l.bf16 %v3037_v52  ;;  %v3034_v35 = vunpack.i.h.bf16 %v3032_v41  ;;  %v3033_v45 = vunpack.i.l.bf16 %v3032_v41  ;;  %v4854_v52 = vld [vmem:[#allocation45_spill] sm:$0xff]  ;;  %v4857_v41 = vld [vmem:[#allocation42_spill] sm:$0xff] }
 0x315   : > { %v2121_v53 = vmul.f32 %v3039_v47, %v1929_v32  ;;  %v2120_v25 = vmul.f32 %v3038_v43, %v1928_v24  ;;  %v2123_v42 = vmul.f32 %v3034_v35, %v1931_v13  ;;  %v2122_v62 = vmul.f32 %v3033_v45, %v1930_v38  ;;  %2191 = vxpose.xlu1.c.b16.end [4/4] (short) (narrow) %v2877_v44, 16  ;;  %v4856_v13 = vld [vmem:[#allocation43_spill] sm:$0xff]  ;;  %v4859_v47 = vld [vmem:[#allocation41_spill] sm:$0xff]  ;;  %v4860_v43 = vld [vmem:[#allocation40_spill] sm:$0xff] }
 0x316   : > { %v3547_v35 = vmov -1e+30  }
 0x317   : > { %v2144_v5 = vpack.c.bf16 %v2123_v42, %v2122_v62  ;;  %v2143_v39 = vpack.c.bf16 %v2121_v53, %v2120_v25  ;;  %v4862_v53 = vlaneseq }
 0x319   : > { %v2239_v50 = vsel %vm2204_vm0, %v2144_v5, 0  ;;  %v2236_v16 = vsel %vm2204_vm0, %v2143_v39, 0  ;;  %v2290_v25 = vand.u32 127, %v4862_v53  ;;  %v4863_v39 = vld [vmem:[#allocation22_spill] sm:$0xff] }
 0x31a   : > { %2263 = vmatpush.bf16.xpose.msra.mxu3 %v2209_v33 }
 0x31b   : > { %v2291_v62 = vadd.s32 128, %v2290_v25  ;;  %v2292_v33 = vadd.s32 %v2290_v25, %v4863_v39 }
 0x31d   : > { %v2293_v14 = vadd.s32 %v2291_v62, %v4863_v39 }
 0x322   : > { %v3047_v15 = vpop.permute.xlu1 %3046 }
 0x323   : > { %v3049_v27 = vunpack.i.h.bf16 %v3047_v15  ;;  %v3048_v31 = vunpack.i.l.bf16 %v3047_v15 }
 0x325   : > { %v2133_v28 = vmul.f32 %v3049_v27, %v1941_v63  ;;  %v2132_v51 = vmul.f32 %v3048_v31, %v1940_v20 }
 0x327   : > { %v2149_v19 = vpack.c.bf16 %v2133_v28, %v2132_v51 }
 0x329   : > { %v2254_v30 = vsel %vm2204_vm0, %v2149_v19, 0 }
 0x32a   : > { %2269 = vmatpush.bf16.xpose.msrb.mxu3 %v2254_v30 }
 0x332   : > { %2270 = vmatpush.bf16.xpose.msrb.mxu3 %v2251_v21  ;;  %v3548_v21 = vmov 0.0  }
 0x333   : > { %492 = vst [vmem:[%s4587_s4] sm:$0x3] %v3548_v21 }
 0x33a   : > { %2271 = vmatpush.bf16.xpose.msrb.mxu3 %v2248_v4 }
 0x342   : > { %2272 = vmatpush.bf16.xpose.msrb.mxu3 %v2245_v36 }
 0x34a   : > { %2273 = vmatpush.bf16.xpose.msrb.mxu3 %v2242_v49 }
 0x352   : > { %2274 = vmatpush.bf16.xpose.msrb.mxu3 %v2239_v50 }
 0x35a   : > { %2275 = vmatpush.bf16.xpose.msrb.mxu3 %v2236_v16 }
 0x362   : > { %2276 = vmatpush.bf16.xpose.msrb.mxu3 %v2233_v3 }
 0x36a   : > { %v2162_v5 = vpop.permute.xlu2 %2161 }
 0x391   : > { %v2196_v9 = vpop.trf.xlu1 }
 0x392   : > { %2784 = vmatmul.msk.bf16.vlgmr.msra.gmra.mxu3 %vm2204_vm0, %v2196_v9 }
 0x393   : > { %2788 = vmatpush.bf16.msk.msra.mxu3 %vm3964_vm10, %v4828_v12 }
 0x397   : > { %2791 = vmatpush.bf16.msk.msra.mxu3 %vm3947_vm6, %v4830_v1 }
 0x39b   : > { %2794 = vmatpush.bf16.msk.msra.mxu3 %vm3926_vm1, %v4832_v7  ;;  %vm2285_vm1 = vcmask 1041408  }
 0x39f   : > { %2797 = vmatpush.bf16.msk.msra.mxu3 %vm3905_vm14, %v4834_v11  ;;  %vm2295_vm14 = vcmp.lt.s32.totalorder %v2293_v14, %v4864_v55 }
 0x3a0   : > { %vm2837_vm10 = vmpackc.low %vm2295_vm14, %vm2295_vm14 }
 0x3a2   : > { %2785 = vmatmul.msk.bf16.vlgmr.msrb.gmra.mxu3 %vm2204_vm0, %v2196_v9 }
 0x3a3   : > { %2800 = vmatpush.bf16.msk.msra.mxu3 %vm3884_vm11, %v4836_v2  ;;  %vm2294_vm11 = vcmp.lt.s32.totalorder %v2292_v33, %v4864_v55 }
 0x3a4   : > { %vm2810_vm6 = vmpackc.low %vm2294_vm11, %vm2294_vm11 }
 0x3a7   : > { %2803 = vmatpush.bf16.msk.msra.mxu3 %vm3863_vm8, %v4838_v6  ;;  %vm489_vm8 = vcmask 1024  }
 0x3a8   : > { %490 = vst.msk [vmem:[%s4559_s2] sm:$0x3] %vm489_vm8, %v3547_v35 }
 0x3a9   : > { %491 = vst.msk [vmem:[%s4585_s21] sm:$0x3] %vm489_vm8, %v3548_v21 }
 0x3ab   : > { %2806 = vmatpush.bf16.msk.msra.mxu3 %vm3842_vm5, %v4840_v18  ;;  %vm4861_vm5 = vnez %v4860_v43 }
 0x3af   : > { %2809 = vmatpush.bf16.msk.msra.mxu3 %vm3821_vm2, %v4842_v59  ;;  %vm4858_vm2 = vnez %v4857_v41  ;;  %v2298_v4 = vld [vmem:[%s4559_s2] sm:$0x3] }
 0x3b3   : > { %2815 = vmatpush.bf16.msk.msrb.mxu3 %vm4192_vm4, %v4844_v58 }
 0x3b7   : > { %2818 = vmatpush.bf16.msk.msrb.mxu3 %vm4164_vm15, %v4846_v37 }
 0x3bb   : > { %2821 = vmatpush.bf16.msk.msrb.mxu3 %vm4129_vm9, %v4848_v22 }
 0x3bf   : > { %2824 = vmatpush.bf16.msk.msrb.mxu3 %vm4096_vm13, %v4850_v34 }
 0x3c3   : > { %2827 = vmatpush.bf16.msk.msrb.mxu3 %vm4063_vm3, %v4852_v54 }
 0x3c7   : > { %2830 = vmatpush.bf16.msk.msrb.mxu3 %vm4033_vm12, %v4854_v52 }
 0x3cb   : > { %2833 = vmatpush.bf16.msk.msrb.mxu3 %vm4858_vm2, %v4856_v13 }
 0x3cf   : > { %2836 = vmatpush.bf16.msk.msrb.mxu3 %vm4861_vm5, %v4859_v47 }
 0x415   : > { %v2265_v45 = vpop.f32.mrf.mxu3 }
 0x416   : > { %v2266_v29 = vadd.f32 %v2265_v45, %v2162_v5 }
 0x418   : > { %v2296_v15 = vsel %vm2294_vm11, %v2266_v29, -1e+30 }
 0x419   : > { %v2299_v31 = vsel %vm2285_vm1, %v2296_v15, -inf }
 0x41d   : > { %v2267_v42 = vpop.f32.mrf.mxu3 }
 0x425   : > { %v2278_v8 = vpop.f32.mrf.mxu3 }
 0x426   : > { %v2279_v20 = vadd.f32 %v2278_v8, %v2162_v5 }
 0x428   : > { %v2284_v63 = vrot.slane %v2279_v20, 6  ;;  %v2297_v27 = vsel %vm2295_vm14, %v2279_v20, -1e+30 }
 0x429   : > { %v2300_v28 = vsel %vm2285_vm1, %v2297_v27, -inf }
 0x42a   : > { %v2286_v51 = vsel %vm2285_vm1, %v2266_v29, %v2284_v63  ;;  %v2301_v19 = vmax.f32 %v2299_v31, %v2300_v28 }
 0x42b   : > { %2288 = vst [vmem:[%s4576_s14] sm:$0xf] %v2286_v51 }
 0x42c   : > { %2302 = vmax.xlane.f32.xlu0 %v2301_v19 }
 0x42d   : > { %v2280_v30 = vpop.f32.mrf.mxu3 }
 0x49f   : > { %v2303_v36 = vpop.xlane.xlu0 %2302 }
 0x4a0   : > { %v2304_v49 = vmax.f32 %v2298_v4, %v2303_v36 }
 0x4a2   : > { %v2305_v50 = vsub.f32 %v2298_v4, %v2304_v49  ;;  %2368 = vst.msk [vmem:[%s4559_s2] sm:$0x3] %vm489_vm8, %v2304_v49  ;;  %2310 = vperm.xlu2 %3050, %v2304_v49   ;;  %s3433_s2 = scalar_lea.hbm %s3432_s30, 4 }
 0x4a3   : > { %p3434_p8 = scmp.ne.s32.totalorder %s3432_s30, %s3433_s2  ;;  %p3439_p12 = scmp.lt.s32.totalorder %s3437_s18, %s3433_s2 }
 0x4a4   : > { %v2306_v16 = vmul.f32 1.442695, %v2305_v50 }
 0x4a5   : > { %p3435_p0 = pnand %p3434_p8, %p3669_p9  ;;  %p3440_p13 = por %p3439_p12, %p3438_p4 }
 0x4a6   : > { %3310 = vpow2.f32 %v2306_v16 }
 0x4a7   : > { %p3436_p3 = pneg %p3435_p0 }
 0x4a9   : > { %p3441_p1 = pnand %p3440_p13, %p3436_p3 }
 0x4ac   : > { %v3311_v3 = vpop.eup %3310 }
 0x4ad   : > { %2334 = vperm.xlu2 %3050, %v3311_v3  }
 0x4fc   : > { %v2311_v9 = vpop.permute.xlu2 %2310 }
 0x4fd   : > { %v2313_v12 = vsub.f32 %v2296_v15, %v2311_v9  ;;  %v2314_v40 = vsub.f32 %v2297_v27, %v2311_v9 }
 0x4ff   : > { %v2315_v1 = vmul.f32 1.442695, %v2313_v12  ;;  %v2317_v17 = vmul.f32 1.442695, %v2314_v40 }
 0x501   : > { %3312 = vpow2.f32 %v2315_v1 }
 0x502   : > { %3314 = vpow2.f32 %v2317_v17 }
 0x507   : > { %v3313_v10 = vpop.eup %3312 }
 0x508   : > { %v3315_v60 = vpop.eup %3314  ;;  %v2811_v7 = vpack.c.bf16 %v3313_v10, %v3313_v10  ;;  %v2319_v23 = vsel %vm2294_vm11, %v3313_v10, 0.0 }
 0x509   : > { %v2320_v11 = vsel %vm2295_vm14, %v3315_v60, 0.0  ;;  %v2323_v48 = vsel %vm2285_vm1, %v2319_v23, 0.0  ;;  %v2838_v6 = vpack.c.bf16 %v3315_v60, %v3315_v60 }
 0x50a   : > { %2812 = vmatmul.msk.bf16.vlgmr.msra.gmra.mxu3 %vm2810_vm6, %v2811_v7  ;;  %v2324_v2 = vsel %vm2285_vm1, %v2320_v11, 0.0 }
 0x50b   : > { %v2325_v26 = vadd.f32 %v2324_v2, %v2323_v48 }
 0x50d   : > { %2326 = vadd.xlane.f32.xlu2 %v2325_v26 }
 0x51a   : > { %2839 = vmatmul.msk.bf16.vlgmr.msrb.gmra.mxu3 %vm2837_vm10, %v2838_v6 }
 0x51b   : > { %3444 = shalt.err (!%p3441_p1)
}
 0x51c   : > { %2888 = dma.vmem_to_hbm [thread:$0]  (%p3669_p9), %s2398_s15, 64, %s2400_s28, %s2370_s26   ;;  %v2335_v0 = vpop.permute.xlu2 %2334  ;;  %v2321_v18 = vld [vmem:[%s4585_s21] sm:$0x3]  ;;  %v2331_v37 = vld [vmem:[%s4587_s4] sm:$0x3] }
 0x51d   : > { %v2322_v46 = vmul.f32 %v3311_v3, %v2321_v18  ;;  %s2844_s1 = sshll.u32 %s3527_s22, 1  ;;  %s2417_s12 = sshll.u32 %s4587_s4, 4  ;;  %v2337_v22 = vmul.f32 %v2335_v0, %v2331_v37  ;;  %s2418_s12 = int_to_ptr.vmem [resolvable:$true] %s2417_s12 }
 0x51e   : > { %s2415_s29 = scalar_lea.hbm %s4678_s11, %s2844_s1  ;;  %s2383_s15 = scalar_lea.sflag [#allocation12], %s3746_s27 }
 0x51f   : > { %s2419_s0 = sshll.u32 %s2415_s29, 4  ;;  %s3465_s30 = scalar_lea.hbm %s4678_s11, 4  ;;  %s2420_s0 = int_to_ptr.hbm [resolvable:$true] %s2419_s0 }
 0x580   : > { %v2327_v59 = vpop.xlane.xlu2 %2326 }
 0x581   : > { %v2328_v61 = vadd.f32 %v2327_v59, %v2322_v46 }
 0x583   : > { %2330 = vst.msk [vmem:[%s4585_s21] sm:$0x3] %vm489_vm8, %v2328_v61  ;;  %s3459_s21 = sshra.s32 %s2420_s0, 4  ;;  %s3460_s21 = int_to_ptr.hbm [resolvable:$true] %s3459_s21 }
 0x584   : > { %s3461_s28 = scalar_lea.hbm %s3460_s21, 2  ;;  %p3466_p10 = scmp.lt.s32.totalorder %s3460_s21, %s4678_s11 }
 0x585   : > { %p3462_p2 = scmp.ne.s32.totalorder %s3460_s21, %s3461_s28  ;;  %p3467_p5 = scmp.lt.s32.totalorder %s3465_s30, %s3461_s28 }
 0x587   : > { %p3463_p6 = pnand %p3462_p2, %p3669_p9  ;;  %p3468_p8 = por %p3467_p5, %p3466_p10 }
 0x589   : > { %p3464_p7 = pneg %p3463_p6 }
 0x58b   : > { %p3469_p0 = pnand %p3468_p8, %p3464_p7 }
 0x58d   : > { %v2349_v58 = vpop.f32.mrf.mxu3 }
 0x595   : > { %v2351_v57 = vpop.f32.mrf.mxu3 }
 0x59d   : > { %v2362_v56 = vpop.f32.mrf.mxu3 }
 0x59e   : > { %v2363_v24 = vadd.f32 %v2362_v56, %v2349_v58 }
 0x5a0   : > { %v2366_v34 = vadd.f32 %v2363_v24, %v2337_v22 }
 0x5a2   : > { %2367 = vst [vmem:[%s4587_s4] sm:$0x3] %v2366_v34 }
 0x5a3   : > { %3472 = shalt.err (!%p3469_p0)
}
 0x5a4   : > { %2889 = dma.vmem_to_hbm [thread:$0]  (%p3669_p9), %s2418_s12, 32, %s2420_s0, %s2383_s15  }
 0x5a5   : > { %v2364_v44 = vpop.f32.mrf.mxu3 }
 0x5a6 PF: > { %s4866_s4 = sld [smem:[#allocation18_spill]]  ;;  %s2431_s16 = sand.u32 1, %s3515_s19  }
 0x5a7   : > { %s2432_s18 = scalar_lea.sflag [#allocation6], %s2431_s16 }
 0x5ac   : > { %p4867_p3 = scmp.ge.s32.totalorder %s4866_s4, 2 }
 0x5ae   : > { %p2900_p4 = pnand %p4867_p3, %p3676_p11 }
 0x5b0   : > { %p2901_p12 = pneg %p2900_p4 }
 0x5b2   : > { %3506 = dma.done.wait (%p2901_p12), %s2432_s18, 64  }
 0x5b3   : > { %3508 = vsyncadd (%p2901_p12), %s2432_s18, 4294967232  ;;  %s2456_s25 = scalar_lea.sflag [#allocation12], %s2431_s16 }
 0x5b4   : > { %3510 = dma.done.wait (%p2901_p12), %s2456_s25, 32  }
 0x5b5   : > { %3512 = vsyncadd (%p2901_p12), %s2456_s25, 4294967264  ;;  %s33_s24 = sadd.s32 1, %s4866_s4   ;;  %s4868_s13 = sld [smem:[#allocation17_spill]] }
 0x5b6   : > { %p30_p13 = scmp.ge.s32.totalorder %s33_s24, 4   ;;  %s4869_s21 = sld [smem:[#allocation20_spill]] }
 0x5b7   : > { %s4870_s1 = sld [smem:[#allocation19_spill]]  ;;  %s4871_s19 = smov %s3519_s20 }
 0x5b8   : > { %s4873_s22 = smov %s3531_s23 }
 0x5b9   :  { %32 = sbr.rel (!%p30_p13) target bundleno = 14 (0xe), region = 146 }
 0x5bb   : > { %s4872_s20 = smov %s4868_s13 }
 0x5bd   : > { %s4874_s23 = smov %s4870_s1 }
 0x5be   :  { %2462 = vsyncpa [#allocation5], 1 }
 0x5bf   :  { %2464 = vsyncpa [#allocation5 + $0x1], 1 }
 0x5c0   :  { %2465 = vsyncpa [#allocation8], 1 }
 0x5c1   :  { %2466 = vsyncpa [#allocation6], 1 }
 0x5c2   :  { %2468 = vsyncpa [#allocation6 + $0x1], 1 }
 0x5c3   :  { %2469 = vsyncpa [#allocation12], 1 }
 0x5c4   :  { %2471 = vsyncpa [#allocation12 + $0x1], 1 }

</bundles_post_ra>
